<compile_context>
chip_gen: v7x
topology: tpu7x:2x2x1
jax: 0.10.0
libtpu: 0.0.40
codegen_flags: <defaults>
</compile_context>

<pallas_src>
import functools

import jax
import jax.numpy as jnp
from jax.experimental import pallas as pl
from jax.experimental.pallas import tpu as pltpu

COMPUTE_DTYPE = jnp.bfloat16            # MXU operand dtype (f32 accumulation)


def _timeloop(S, body, c0, *, reverse=False, unroll_limit=64):
    """Serial recurrence over t in [0,S). body(t, c) -> c, side effects via refs.
    Python-unrolled (static indices) for small S, lax.fori_loop for large S."""
    if S <= unroll_limit:
        c = c0
        for i in range(S):
            t = (S - 1 - i) if reverse else i
            c = body(t, c)
        return c

    def fbody(i, c):
        t = (S - 1 - i) if reverse else i
        return body(t, c)

    return jax.lax.fori_loop(0, S, fbody, c0)


# ----------------------------------------------------------------------------
# Fused Pallas kernel: all quasi-LSTM layers (both directions) + FC head
# ----------------------------------------------------------------------------

def _fused_forward_kernel(*refs, num_layers, window, hidden):
    """refs = [x, (W_l, b_l)*L, wa, ba, w1, b1, w2, b2, w3, b3, out, g_sc, h_sc]

    x    : (S, TB, Din)           f32 block, time-leading
    W_l  : (Din_l, window*6H)     bf16, lanes = [fwd k0..k{w-1}(z|f|o) | bwd ...]
    b_l  : (1, 6H)                f32,  lanes = [z_f|f_f|o_f|z_b|f_b|o_b]
    head : wa (1,2H), ba (1,1), w1 (6H,lin1) bf16, w2, w3 bf16, biases f32
    out  : (TB, output_size)      f32 block
    g_sc : (S, TB, 6H)            f32 gate pre-acts, then [iz|f|o] x 2 post-act
    h_sc : (S, TB, 2H)            f32 layer output [h_fwd | h_bwd]
    """
    H = hidden
    G3 = 3 * H
    x_ref = refs[0]
    layer_refs = refs[1:1 + 2 * num_layers]
    (wa_ref, ba_ref, w1_ref, b1_ref,
     w2_ref, b2_ref, w3_ref, b3_ref) = refs[1 + 2 * num_layers:-3]
    out_ref, g_ref, h_ref = refs[-3], refs[-2], refs[-1]

    S, B, _ = x_ref.shape                      # B here == batch tile TB
    f32 = jnp.float32

    for layer_idx in range(num_layers):
        w_ref = layer_refs[2 * layer_idx]      # (din, window*6H) bf16
        b_ref = layer_refs[2 * layer_idx + 1]  # (1, 6H)          f32
        din = w_ref.shape[0]

        h_in = x_ref[...] if layer_idx == 0 else h_ref[...]
        x2d = h_in.reshape(S * B, din).astype(COMPUTE_DTYPE)

        # ONE fused MXU matmul: both directions, all gates, all window offsets.
        p = jnp.dot(x2d, w_ref[...], preferred_element_type=f32)
        p = p.reshape(S, B, window * 6 * H)
        bias = b_ref[...]                      # (1, 6H)

        # Shift-accumulate window offsets into the gate scratch:
        # shift(x,k) @ W_k == shift(x @ W_k, k); fwd uses x[t-k], bwd x[t+k].
        off_b = window * G3
        g_ref[:, :, 0:G3] = p[:, :, 0:G3] + bias[:, 0:G3]
        g_ref[:, :, G3:2 * G3] = p[:, :, off_b:off_b + G3] + bias[:, G3:2 * G3]
        for k in range(1, window):
            if k >= S:
                continue
            pf = p[:, :, k * G3:(k + 1) * G3]
            pb = p[:, :, off_b + k * G3:off_b + (k + 1) * G3]
            g_ref[k:S, :, 0:G3] += pf[0:S - k]
            g_ref[0:S - k, :, G3:2 * G3] += pb[k:S]

        # Activations (sigmoid fused over adjacent f|o lanes per direction);
        # precompute iz = (1-f)*z so the serial step is a single FMA-shaped op.
        g = g_ref[...]
        z_f = jnp.tanh(g[..., 0:H])
        fo_f = jax.nn.sigmoid(g[..., H:G3])                    # (f_f | o_f)
        z_b = jnp.tanh(g[..., G3:G3 + H])
        fo_b = jax.nn.sigmoid(g[..., G3 + H:2 * G3])           # (f_b | o_b)
        g_ref[:, :, 0:H] = (1.0 - fo_f[..., 0:H]) * z_f
        g_ref[:, :, H:G3] = fo_f
        g_ref[:, :, G3:G3 + H] = (1.0 - fo_b[..., 0:H]) * z_b
        g_ref[:, :, G3 + H:2 * G3] = fo_b

        # fo-pooling recurrence: each step reads one (TB,6H) slab and writes one
        # (TB,H) slab straight to VMEM; only the carry c stays live.
        c0 = jnp.zeros((B, H), f32)

        def fwd_step(t, c):
            g_t = g_ref[t]
            c = g_t[:, H:2 * H] * c + g_t[:, 0:H]
            h_ref[t, :, 0:H] = g_t[:, 2 * H:3 * H] * c
            return c

        def bwd_step(t, c):
            g_t = g_ref[t]
            c = g_t[:, 4 * H:5 * H] * c + g_t[:, 3 * H:4 * H]
            h_ref[t, :, H:2 * H] = g_t[:, 5 * H:6 * H] * c
            return c

        _timeloop(S, fwd_step, c0)
        _timeloop(S, bwd_step, c0, reverse=True)

    h = h_ref[...]                                              # (S, TB, 2H)

    # ---- fullyConnected head: attention + max + mean pooling -> 3-layer MLP
    scores = jnp.sum(h * wa_ref[...], axis=-1, keepdims=True) + ba_ref[...]
    scores = scores - jnp.max(scores, axis=0, keepdims=True)
    pexp = jnp.exp(scores)
    pnorm = pexp * pl.reciprocal(jnp.sum(pexp, axis=0, keepdims=True), approx=True)
    attn_vec = jnp.sum(pnorm * h, axis=0)                       # (TB, 2H)
    max_pool = jnp.max(h, axis=0)                               # (TB, 2H)
    avg_pool = jnp.sum(h, axis=0) * (1.0 / S)                   # (TB, 2H)

    pooled = jnp.concatenate([attn_vec, max_pool, avg_pool],
                             axis=-1).astype(COMPUTE_DTYPE)     # (TB, 6H)
    h1 = jnp.maximum(
        jnp.dot(pooled, w1_ref[...], preferred_element_type=jnp.float32)
        + b1_ref[...], 0.0)
    h2 = jnp.maximum(
        jnp.dot(h1.astype(COMPUTE_DTYPE), w2_ref[...],
                preferred_element_type=jnp.float32) + b2_ref[...], 0.0)
    out_ref[...] = (jnp.dot(h2.astype(COMPUTE_DTYPE), w3_ref[...],
                            preferred_element_type=jnp.float32)
                    + b3_ref[...]).astype(out_ref.dtype)


# ----------------------------------------------------------------------------
# Wrapper: whole forward pass = ONE pallas_call (batch-tiled grid)
# ----------------------------------------------------------------------------

def model_forward_pallas(x, fused, *, window, hidden, batch_tile=None):
    """x: (B, S, D) float32.  fused: output of prepare_fused_params()."""
    layers = fused['layers']
    head = fused['head']
    num_layers = len(layers)
    H = hidden
    B, S, D = x.shape
    out_size = head['w3'].shape[1]

    TB = B if batch_tile is None else batch_tile
    assert TB == B or (TB % 8 == 0 and B % TB == 0), \
        "batch tile must equal B or be a multiple of 8 dividing B"

    # TODO(synk): fold this transpose into the kernel's batch-grid load for
    # production shapes (saves one HBM round trip of x).
    x_t = jnp.transpose(x, (1, 0, 2))                   # (S, B, D) time-leading

    def full_spec(arr):
        return pl.BlockSpec(arr.shape, lambda i: (0,) * arr.ndim)

    inputs = [x_t]
    in_specs = [pl.BlockSpec((S, TB, D), lambda i: (0, i, 0))]
    for w, b in layers:
        inputs += [w, b]
        in_specs += [full_spec(w), full_spec(b)]
    for name in ('wa', 'ba', 'w1', 'b1', 'w2', 'b2', 'w3', 'b3'):
        inputs.append(head[name])
        in_specs.append(full_spec(head[name]))

    kernel = functools.partial(_fused_forward_kernel, num_layers=num_layers,
                               window=window, hidden=H)
    return pl.pallas_call(
        kernel,
        out_shape=jax.ShapeDtypeStruct((B, out_size), jnp.float32),
        grid=(pl.cdiv(B, TB),),
        in_specs=in_specs,
        out_specs=pl.BlockSpec((TB, out_size), lambda i: (i, 0)),
        scratch_shapes=[
            pltpu.VMEM((S, TB, 6 * H), jnp.float32),    # gates / [iz|f|o] x 2
            pltpu.VMEM((S, TB, 2 * H), jnp.float32),    # layer output
        ],
        compiler_params=pltpu.CompilerParams(
            # batch tiles shard across v7x's 2 TensorCores; no-op on v5e/v6e
            dimension_semantics=("parallel",),
            # TODO(synk): budget per generation (64 MiB/TC v7x, 128 MiB v5e/v6e)
            vmem_limit_bytes=48 * 1024 * 1024,
        ),
    )(*inputs)


# ----------------------------------------------------------------------------
# Parameter init (raw, PyTorch-style) and fused-weight preparation
# ----------------------------------------------------------------------------

def init_params(key, *, input_dim, lstm_out, lstm_layers, window,
                linear_out1, linear_out2, output_size):
    keys = iter(jax.random.split(key, 128))

    def lin(kin, kout):
        w = jax.random.normal(next(keys), (kin, kout), jnp.float32) / jnp.sqrt(kin)
        b = 0.01 * jax.random.normal(next(keys), (1, kout), jnp.float32)
        return w, b

    qrnn_layers = []
    din = input_dim
    for _ in range(lstm_layers):
        layer = {}
        for d in ('fwd', 'bwd'):
            wz, bz = lin(window * din, lstm_out)
            wf, bf = lin(window * din, lstm_out)
            wo, bo = lin(window * din, lstm_out)
            layer[d] = (wz, wf, wo, bz, bf, bo)
        qrnn_layers.append(layer)
        din = 2 * lstm_out

    L = 2 * lstm_out
    wa = jax.random.normal(next(keys), (1, L), jnp.float32) / jnp.sqrt(L)
    ba = 0.01 * jax.random.normal(next(keys), (1, 1), jnp.float32)
    w1a, b1 = lin(L, linear_out1)
    w1m, _ = lin(L, linear_out1)
    w1g, _ = lin(L, linear_out1)
    w2, b2 = lin(linear_out1, linear_out2)
    w3, b3 = lin(linear_out2, output_size)
    fc = dict(wa=wa, ba=ba, w1a=w1a, w1m=w1m, w1g=w1g, b1=b1,
              w2=w2, b2=b2, w3=w3, b3=b3)
    return {'qrnn_layers': qrnn_layers, 'fc': fc}


def prepare_fused_params(params, *, window):
    """Fuse all gate weights of one layer into a single (Din, window*6H) bf16
    matrix (lanes = [fwd: k=0..w-1 each (z|f|o) | bwd: same]); bias lanes are
    [z_f|f_f|o_f|z_b|f_b|o_b].  Head W1 blocks concat -> (3L, lin1) bf16."""
    layers = []
    for layer in params['qrnn_layers']:
        def split(w):                            # (window*din, H) -> (window, din, H)
            kin, hh = w.shape
            return w.reshape(window, kin // window, hh)

        def dir_block(wz, wf, wo):
            blk = jnp.concatenate([split(wz), split(wf), split(wo)], axis=-1)
            win, din, g3 = blk.shape             # (window, din, 3H)
            return jnp.transpose(blk, (1, 0, 2)).reshape(din, win * g3)

        wzf, wff, wof, bzf, bff, bof = layer['fwd']
        wzb, wfb, wob, bzb, bfb, bob = layer['bwd']
        W = jnp.concatenate([dir_block(wzf, wff, wof),
                             dir_block(wzb, wfb, wob)], axis=-1)
        b = jnp.concatenate([bzf, bff, bof, bzb, bfb, bob], axis=-1)
        layers.append((W.astype(COMPUTE_DTYPE), b.astype(jnp.float32)))

    fc = params['fc']
    w1 = jnp.concatenate([fc['w1a'], fc['w1m'], fc['w1g']], axis=0)
    head = dict(wa=fc['wa'], ba=fc['ba'],
                w1=w1.astype(COMPUTE_DTYPE), b1=fc['b1'],
                w2=fc['w2'].astype(COMPUTE_DTYPE), b2=fc['b2'],
                w3=fc['w3'].astype(COMPUTE_DTYPE), b3=fc['b3'])
    return {'layers': layers, 'head': head}


# ----------------------------------------------------------------------------
# Pure-JAX reference (original unfused structure, same bf16 matmul dtype)
# ----------------------------------------------------------------------------

def windowize(x, window):
    parts = [x]
    S = x.shape[1]
    for k in range(1, window):
        parts.append(jnp.pad(x, ((0, 0), (k, 0), (0, 0)))[:, :S, :])
    return jnp.concatenate(parts, axis=-1)


def _qrnn_dir_ref(xwin, wz, wf, wo, bz, bf, bo):
    cd, pe = COMPUTE_DTYPE, dict(preferred_element_type=jnp.float32)
    xw = xwin.astype(cd)
    z = jnp.tanh(jnp.einsum('bsd,dh->bsh', xw, wz.astype(cd), **pe) + bz)
    f = jax.nn.sigmoid(jnp.einsum('bsd,dh->bsh', xw, wf.astype(cd), **pe) + bf)
    o = jax.nn.sigmoid(jnp.einsum('bsd,dh->bsh', xw, wo.astype(cd), **pe) + bo)
    B, S, H = z.shape
    c = jnp.zeros((B, H), jnp.float32)
    hs = []
    for t in range(S):
        c = f[:, t] * c + (1.0 - f[:, t]) * z[:, t]
        hs.append(o[:, t] * c)
    return jnp.stack(hs, axis=1)


def _fc_head_ref(h, fc):
    scores = jnp.sum(h * fc['wa'], axis=-1, keepdims=True) + fc['ba']
    scores = scores - jnp.max(scores, axis=1, keepdims=True)
    p = jnp.exp(scores)
    p = p / jnp.sum(p, axis=1, keepdims=True)
    attn_vec = jnp.sum(p * h, axis=1)
    max_pool = jnp.max(h, axis=1)
    avg_pool = jnp.mean(h, axis=1)
    cd, pe = COMPUTE_DTYPE, dict(preferred_element_type=jnp.float32)
    h1 = jax.nn.relu(jnp.dot(attn_vec.astype(cd), fc['w1a'].astype(cd), **pe)
                     + jnp.dot(max_pool.astype(cd), fc['w1m'].astype(cd), **pe)
                     + jnp.dot(avg_pool.astype(cd), fc['w1g'].astype(cd), **pe)
                     + fc['b1'])
    h2 = jax.nn.relu(jnp.dot(h1.astype(cd), fc['w2'].astype(cd), **pe) + fc['b2'])
    return jnp.dot(h2.astype(cd), fc['w3'].astype(cd), **pe) + fc['b3']


def model_forward_ref(x, params, *, window):
    h = x
    for layer in params['qrnn_layers']:
        xw_f = windowize(h, window)
        h_f = _qrnn_dir_ref(xw_f, *layer['fwd'])
        x_rev = h[:, ::-1, :]
        xw_b = windowize(x_rev, window)
        h_b = _qrnn_dir_ref(xw_b, *layer['bwd'])[:, ::-1, :]
        h = jnp.concatenate([h_f, h_b], axis=-1)
    return _fc_head_ref(h, params['fc'])


# ----------------------------------------------------------------------------

def _build_and_check(args, B, S, key):
    k_x, k_p = jax.random.split(key)
    x = jax.random.normal(k_x, (B, S, args['inputDim']), jnp.float32)
    params = init_params(k_p,
                         input_dim=args['inputDim'], lstm_out=args['lstm_out'],
                         lstm_layers=args['lstm_layers'],
                         window=args['window_size'],
                         linear_out1=args['linear_out1'],
                         linear_out2=args['linear_out2'],
                         output_size=args['output_size'])
    fused = prepare_fused_params(params, window=args['window_size'])

    fwd_fn = jax.jit(functools.partial(model_forward_pallas,
                                       window=args['window_size'],
                                       hidden=args['lstm_out']))
    out = jax.block_until_ready(fwd_fn(x, fused))
    ref = jax.block_until_ready(model_forward_ref(x, params,
                                                  window=args['window_size']))

    assert out.shape == (B, args['output_size'])
    assert bool(jnp.all(jnp.isfinite(out)))
    assert jnp.allclose(out, ref, rtol=2e-2, atol=2e-2)
    return out


if __name__ == "__main__":
    # args consistent with myModel(**args)
    args = dict(inputDim=16, lstm_out=16, lstm_layers=1, lstm_dropout=0.1,
                window_size=2, linear_out1=32, linear_out2=16,
                dropout1=0.1, dropout2=0.1, output_size=4)
    _build_and_check(args, B=2, S=8, key=jax.random.PRNGKey(0))

    # second config: exercises multi-layer + larger window in the same kernel
    args2 = dict(inputDim=8, lstm_out=8, lstm_layers=2, lstm_dropout=0.1,
                 window_size=3, linear_out1=16, linear_out2=8,
                 dropout1=0.1, dropout2=0.1, output_size=3)
    _build_and_check(args2, B=2, S=8, key=jax.random.PRNGKey(1))

    print("KERNEL_OK")
</pallas_src>

<mosaic_0001>
module attributes {stable_mosaic.version = 11 : i64} {
  func.func @_fused_forward_kernel(%arg0: i32, %arg1: memref<8x2x16xf32, #tpu.memory_space<vmem>>, %arg2: memref<16x192xbf16, #tpu.memory_space<vmem>>, %arg3: memref<1x96xf32, #tpu.memory_space<vmem>>, %arg4: memref<1x32xf32, #tpu.memory_space<vmem>>, %arg5: memref<1x1xf32, #tpu.memory_space<vmem>>, %arg6: memref<96x32xbf16, #tpu.memory_space<vmem>>, %arg7: memref<1x32xf32, #tpu.memory_space<vmem>>, %arg8: memref<32x16xbf16, #tpu.memory_space<vmem>>, %arg9: memref<1x16xf32, #tpu.memory_space<vmem>>, %arg10: memref<16x4xbf16, #tpu.memory_space<vmem>>, %arg11: memref<1x4xf32, #tpu.memory_space<vmem>>, %arg12: memref<2x4xf32, #tpu.memory_space<vmem>>, %arg13: memref<8x2x96xf32, #tpu.memory_space<vmem>>, %arg14: memref<8x2x32xf32, #tpu.memory_space<vmem>>) attributes {dimension_semantics = [#tpu.dimension_semantics<parallel>], iteration_bounds = array<i64: 1>, scalar_prefetch = 0 : i64, scratch_operands = 2 : i64, tpu.core_type = #tpu.core_type<tc>, window_params = [{transform_indices = @transform_0, window_bounds = array<i64: 8, 2, 16>}, {pipeline_mode = #tpu.pipeline_mode<synchronous>, transform_indices = @transform_1, window_bounds = array<i64: 16, 192>}, {pipeline_mode = #tpu.pipeline_mode<synchronous>, transform_indices = @transform_2, window_bounds = array<i64: 1, 96>}, {pipeline_mode = #tpu.pipeline_mode<synchronous>, transform_indices = @transform_3, window_bounds = array<i64: 1, 32>}, {pipeline_mode = #tpu.pipeline_mode<synchronous>, transform_indices = @transform_4, window_bounds = array<i64: 1, 1>}, {pipeline_mode = #tpu.pipeline_mode<synchronous>, transform_indices = @transform_5, window_bounds = array<i64: 96, 32>}, {pipeline_mode = #tpu.pipeline_mode<synchronous>, transform_indices = @transform_6, window_bounds = array<i64: 1, 32>}, {pipeline_mode = #tpu.pipeline_mode<synchronous>, transform_indices = @transform_7, window_bounds = array<i64: 32, 16>}, {pipeline_mode = #tpu.pipeline_mode<synchronous>, transform_indices = @transform_8, window_bounds = array<i64: 1, 16>}, {pipeline_mode = #tpu.pipeline_mode<synchronous>, transform_indices = @transform_9, window_bounds = array<i64: 16, 4>}, {pipeline_mode = #tpu.pipeline_mode<synchronous>, transform_indices = @transform_10, window_bounds = array<i64: 1, 4>}, {transform_indices = @transform_11, window_bounds = array<i64: 2, 4>}]} {
    %c0 = arith.constant 0 : index
    %c0_0 = arith.constant 0 : index
    %c0_1 = arith.constant 0 : index
    %0 = vector.load %arg1[%c0, %c0_0, %c0_1] : memref<8x2x16xf32, #tpu.memory_space<vmem>>, vector<8x2x16xf32>
    %1 = vector.shape_cast %0 : vector<8x2x16xf32> to vector<16x16xf32>
    %2 = arith.truncf %1 : vector<16x16xf32> to vector<16x16xbf16>
    %c0_2 = arith.constant 0 : index
    %c0_3 = arith.constant 0 : index
    %3 = vector.load %arg2[%c0_2, %c0_3] : memref<16x192xbf16, #tpu.memory_space<vmem>>, vector<16x192xbf16>
    %cst = arith.constant dense<0.000000e+00> : vector<16x192xf32>
    %4 = tpu.matmul %2, %3, %cst {dimension_numbers = #tpu.dot_dimension_numbers<[1], [0], [0], [1], [0, 0, 1, 1], [], []>} : vector<16x16xbf16>, vector<16x192xbf16>, vector<16x192xf32> -> vector<16x192xf32>
    %5 = vector.shape_cast %4 : vector<16x192xf32> to vector<8x2x192xf32>
    %c0_4 = arith.constant 0 : index
    %c0_5 = arith.constant 0 : index
    %6 = vector.load %arg3[%c0_4, %c0_5] : memref<1x96xf32, #tpu.memory_space<vmem>>, vector<1x96xf32>
    %7 = vector.extract_strided_slice %5 {offsets = [0, 0, 0], sizes = [8, 2, 48], strides = [1, 1, 1]} : vector<8x2x192xf32> to vector<8x2x48xf32>
    %8 = vector.extract_strided_slice %6 {offsets = [0, 0], sizes = [1, 48], strides = [1, 1]} : vector<1x96xf32> to vector<1x48xf32>
    %9 = vector.shape_cast %8 : vector<1x48xf32> to vector<1x1x48xf32>
    %10 = vector.broadcast %9 : vector<1x1x48xf32> to vector<8x2x48xf32>
    %11 = arith.addf %7, %10 : vector<8x2x48xf32>
    %c0_6 = arith.constant 0 : index
    %c0_7 = arith.constant 0 : index
    %c0_8 = arith.constant 0 : index
    %12 = vector.load %arg13[%c0_6, %c0_7, %c0_8] : memref<8x2x96xf32, #tpu.memory_space<vmem>>, vector<8x2x48xf32>
    tpu.vector_store %arg13[%c0_6, %c0_7, %c0_8], %11 {strides = array<i32>} : memref<8x2x96xf32, #tpu.memory_space<vmem>>, vector<8x2x48xf32>,
    %13 = vector.extract_strided_slice %5 {offsets = [0, 0, 96], sizes = [8, 2, 48], strides = [1, 1, 1]} : vector<8x2x192xf32> to vector<8x2x48xf32>
    %14 = vector.extract_strided_slice %6 {offsets = [0, 48], sizes = [1, 48], strides = [1, 1]} : vector<1x96xf32> to vector<1x48xf32>
    %15 = vector.shape_cast %14 : vector<1x48xf32> to vector<1x1x48xf32>
    %16 = vector.broadcast %15 : vector<1x1x48xf32> to vector<8x2x48xf32>
    %17 = arith.addf %13, %16 : vector<8x2x48xf32>
    %c0_9 = arith.constant 0 : index
    %c0_10 = arith.constant 0 : index
    %c48 = arith.constant 48 : index
    %18 = vector.load %arg13[%c0_9, %c0_10, %c48] : memref<8x2x96xf32, #tpu.memory_space<vmem>>, vector<8x2x48xf32>
    tpu.vector_store %arg13[%c0_9, %c0_10, %c48], %17 {strides = array<i32>} : memref<8x2x96xf32, #tpu.memory_space<vmem>>, vector<8x2x48xf32>,
    %19 = vector.extract_strided_slice %5 {offsets = [0, 0, 48], sizes = [8, 2, 48], strides = [1, 1, 1]} : vector<8x2x192xf32> to vector<8x2x48xf32>
    %20 = vector.extract_strided_slice %5 {offsets = [0, 0, 144], sizes = [8, 2, 48], strides = [1, 1, 1]} : vector<8x2x192xf32> to vector<8x2x48xf32>
    %c1 = arith.constant 1 : index
    %c0_11 = arith.constant 0 : index
    %c0_12 = arith.constant 0 : index
    %21 = vector.load %arg13[%c1, %c0_11, %c0_12] : memref<8x2x96xf32, #tpu.memory_space<vmem>>, vector<7x2x48xf32>
    %22 = vector.extract_strided_slice %19 {offsets = [0, 0, 0], sizes = [7, 2, 48], strides = [1, 1, 1]} : vector<8x2x48xf32> to vector<7x2x48xf32>
    %23 = arith.addf %21, %22 : vector<7x2x48xf32>
    %c1_13 = arith.constant 1 : index
    %c0_14 = arith.constant 0 : index
    %c0_15 = arith.constant 0 : index
    %24 = vector.load %arg13[%c1_13, %c0_14, %c0_15] : memref<8x2x96xf32, #tpu.memory_space<vmem>>, vector<7x2x48xf32>
    tpu.vector_store %arg13[%c1_13, %c0_14, %c0_15], %23 {strides = array<i32>} : memref<8x2x96xf32, #tpu.memory_space<vmem>>, vector<7x2x48xf32>,
    %c0_16 = arith.constant 0 : index
    %c0_17 = arith.constant 0 : index
    %c48_18 = arith.constant 48 : index
    %25 = vector.load %arg13[%c0_16, %c0_17, %c48_18] : memref<8x2x96xf32, #tpu.memory_space<vmem>>, vector<7x2x48xf32>
    %26 = vector.extract_strided_slice %20 {offsets = [1, 0, 0], sizes = [7, 2, 48], strides = [1, 1, 1]} : vector<8x2x48xf32> to vector<7x2x48xf32>
    %27 = arith.addf %25, %26 : vector<7x2x48xf32>
    %c0_19 = arith.constant 0 : index
    %c0_20 = arith.constant 0 : index
    %c48_21 = arith.constant 48 : index
    %28 = vector.load %arg13[%c0_19, %c0_20, %c48_21] : memref<8x2x96xf32, #tpu.memory_space<vmem>>, vector<7x2x48xf32>
    tpu.vector_store %arg13[%c0_19, %c0_20, %c48_21], %27 {strides = array<i32>} : memref<8x2x96xf32, #tpu.memory_space<vmem>>, vector<7x2x48xf32>,
    %c0_22 = arith.constant 0 : index
    %c0_23 = arith.constant 0 : index
    %c0_24 = arith.constant 0 : index
    %29 = vector.load %arg13[%c0_22, %c0_23, %c0_24] : memref<8x2x96xf32, #tpu.memory_space<vmem>>, vector<8x2x96xf32>
    %30 = vector.extract_strided_slice %29 {offsets = [0, 0, 0], sizes = [8, 2, 16], strides = [1, 1, 1]} : vector<8x2x96xf32> to vector<8x2x16xf32>
    %31 = math.tanh %30 : vector<8x2x16xf32>
    %32 = vector.extract_strided_slice %29 {offsets = [0, 0, 16], sizes = [8, 2, 32], strides = [1, 1, 1]} : vector<8x2x96xf32> to vector<8x2x32xf32>
    %33 = arith.negf %32 : vector<8x2x32xf32>
    %34 = math.exp %33 : vector<8x2x32xf32>
    %cst_25 = arith.constant 1.000000e+00 : f32
    %35 = vector.broadcast %cst_25 : f32 to vector<8x2x32xf32>
    %36 = arith.addf %35, %34 : vector<8x2x32xf32>
    %37 = arith.divf %35, %36 : vector<8x2x32xf32>
    %38 = vector.extract_strided_slice %29 {offsets = [0, 0, 48], sizes = [8, 2, 16], strides = [1, 1, 1]} : vector<8x2x96xf32> to vector<8x2x16xf32>
    %39 = math.tanh %38 : vector<8x2x16xf32>
    %40 = vector.extract_strided_slice %29 {offsets = [0, 0, 64], sizes = [8, 2, 32], strides = [1, 1, 1]} : vector<8x2x96xf32> to vector<8x2x32xf32>
    %41 = arith.negf %40 : vector<8x2x32xf32>
    %42 = math.exp %41 : vector<8x2x32xf32>
    %cst_26 = arith.constant 1.000000e+00 : f32
    %43 = vector.broadcast %cst_26 : f32 to vector<8x2x32xf32>
    %44 = arith.addf %43, %42 : vector<8x2x32xf32>
    %45 = arith.divf %43, %44 : vector<8x2x32xf32>
    %46 = vector.extract_strided_slice %37 {offsets = [0, 0, 0], sizes = [8, 2, 16], strides = [1, 1, 1]} : vector<8x2x32xf32> to vector<8x2x16xf32>
    %cst_27 = arith.constant 1.000000e+00 : f32
    %47 = vector.broadcast %cst_27 : f32 to vector<8x2x16xf32>
    %48 = arith.subf %47, %46 : vector<8x2x16xf32>
    %49 = arith.mulf %48, %31 : vector<8x2x16xf32>
    %c0_28 = arith.constant 0 : index
    %c0_29 = arith.constant 0 : index
    %c0_30 = arith.constant 0 : index
    %50 = vector.load %arg13[%c0_28, %c0_29, %c0_30] : memref<8x2x96xf32, #tpu.memory_space<vmem>>, vector<8x2x16xf32>
    tpu.vector_store %arg13[%c0_28, %c0_29, %c0_30], %49 {strides = array<i32>} : memref<8x2x96xf32, #tpu.memory_space<vmem>>, vector<8x2x16xf32>,
    %c0_31 = arith.constant 0 : index
    %c0_32 = arith.constant 0 : index
    %c16 = arith.constant 16 : index
    %51 = vector.load %arg13[%c0_31, %c0_32, %c16] : memref<8x2x96xf32, #tpu.memory_space<vmem>>, vector<8x2x32xf32>
    tpu.vector_store %arg13[%c0_31, %c0_32, %c16], %37 {strides = array<i32>} : memref<8x2x96xf32, #tpu.memory_space<vmem>>, vector<8x2x32xf32>,
    %52 = vector.extract_strided_slice %45 {offsets = [0, 0, 0], sizes = [8, 2, 16], strides = [1, 1, 1]} : vector<8x2x32xf32> to vector<8x2x16xf32>
    %cst_33 = arith.constant 1.000000e+00 : f32
    %53 = vector.broadcast %cst_33 : f32 to vector<8x2x16xf32>
    %54 = arith.subf %53, %52 : vector<8x2x16xf32>
    %55 = arith.mulf %54, %39 : vector<8x2x16xf32>
    %c0_34 = arith.constant 0 : index
    %c0_35 = arith.constant 0 : index
    %c48_36 = arith.constant 48 : index
    %56 = vector.load %arg13[%c0_34, %c0_35, %c48_36] : memref<8x2x96xf32, #tpu.memory_space<vmem>>, vector<8x2x16xf32>
    tpu.vector_store %arg13[%c0_34, %c0_35, %c48_36], %55 {strides = array<i32>} : memref<8x2x96xf32, #tpu.memory_space<vmem>>, vector<8x2x16xf32>,
    %c0_37 = arith.constant 0 : index
    %c0_38 = arith.constant 0 : index
    %c64 = arith.constant 64 : index
    %57 = vector.load %arg13[%c0_37, %c0_38, %c64] : memref<8x2x96xf32, #tpu.memory_space<vmem>>, vector<8x2x32xf32>
    tpu.vector_store %arg13[%c0_37, %c0_38, %c64], %45 {strides = array<i32>} : memref<8x2x96xf32, #tpu.memory_space<vmem>>, vector<8x2x32xf32>,
    %cst_39 = arith.constant 0.000000e+00 : f32
    %58 = vector.broadcast %cst_39 : f32 to vector<2x16xf32>
    %c0_40 = arith.constant 0 : index
    %c0_41 = arith.constant 0 : index
    %c0_42 = arith.constant 0 : index
    %59 = vector.load %arg13[%c0_40, %c0_41, %c0_42] : memref<8x2x96xf32, #tpu.memory_space<vmem>>, vector<1x2x96xf32>
    %60 = vector.shape_cast %59 : vector<1x2x96xf32> to vector<2x96xf32>
    %61 = vector.extract_strided_slice %60 {offsets = [0, 16], sizes = [2, 16], strides = [1, 1]} : vector<2x96xf32> to vector<2x16xf32>
    %62 = arith.mulf %61, %58 : vector<2x16xf32>
    %63 = vector.extract_strided_slice %60 {offsets = [0, 0], sizes = [2, 16], strides = [1, 1]} : vector<2x96xf32> to vector<2x16xf32>
    %64 = arith.addf %62, %63 : vector<2x16xf32>
    %65 = vector.extract_strided_slice %60 {offsets = [0, 32], sizes = [2, 16], strides = [1, 1]} : vector<2x96xf32> to vector<2x16xf32>
    %66 = arith.mulf %65, %64 : vector<2x16xf32>
    %c0_43 = arith.constant 0 : index
    %c0_44 = arith.constant 0 : index
    %c0_45 = arith.constant 0 : index
    %67 = vector.load %arg14[%c0_43, %c0_44, %c0_45] : memref<8x2x32xf32, #tpu.memory_space<vmem>>, vector<1x2x16xf32>
    %68 = vector.shape_cast %67 : vector<1x2x16xf32> to vector<2x16xf32>
    %69 = vector.shape_cast %66 : vector<2x16xf32> to vector<1x2x16xf32>
    tpu.vector_store %arg14[%c0_43, %c0_44, %c0_45], %69 {strides = array<i32>} : memref<8x2x32xf32, #tpu.memory_space<vmem>>, vector<1x2x16xf32>,
    %c1_46 = arith.constant 1 : index
    %c0_47 = arith.constant 0 : index
    %c0_48 = arith.constant 0 : index
    %70 = vector.load %arg13[%c1_46, %c0_47, %c0_48] : memref<8x2x96xf32, #tpu.memory_space<vmem>>, vector<1x2x96xf32>
    %71 = vector.shape_cast %70 : vector<1x2x96xf32> to vector<2x96xf32>
    %72 = vector.extract_strided_slice %71 {offsets = [0, 16], sizes = [2, 16], strides = [1, 1]} : vector<2x96xf32> to vector<2x16xf32>
    %73 = arith.mulf %72, %64 : vector<2x16xf32>
    %74 = vector.extract_strided_slice %71 {offsets = [0, 0], sizes = [2, 16], strides = [1, 1]} : vector<2x96xf32> to vector<2x16xf32>
    %75 = arith.addf %73, %74 : vector<2x16xf32>
    %76 = vector.extract_strided_slice %71 {offsets = [0, 32], sizes = [2, 16], strides = [1, 1]} : vector<2x96xf32> to vector<2x16xf32>
    %77 = arith.mulf %76, %75 : vector<2x16xf32>
    %c1_49 = arith.constant 1 : index
    %c0_50 = arith.constant 0 : index
    %c0_51 = arith.constant 0 : index
    %78 = vector.load %arg14[%c1_49, %c0_50, %c0_51] : memref<8x2x32xf32, #tpu.memory_space<vmem>>, vector<1x2x16xf32>
    %79 = vector.shape_cast %78 : vector<1x2x16xf32> to vector<2x16xf32>
    %80 = vector.shape_cast %77 : vector<2x16xf32> to vector<1x2x16xf32>
    tpu.vector_store %arg14[%c1_49, %c0_50, %c0_51], %80 {strides = array<i32>} : memref<8x2x32xf32, #tpu.memory_space<vmem>>, vector<1x2x16xf32>,
    %c2 = arith.constant 2 : index
    %c0_52 = arith.constant 0 : index
    %c0_53 = arith.constant 0 : index
    %81 = vector.load %arg13[%c2, %c0_52, %c0_53] : memref<8x2x96xf32, #tpu.memory_space<vmem>>, vector<1x2x96xf32>
    %82 = vector.shape_cast %81 : vector<1x2x96xf32> to vector<2x96xf32>
    %83 = vector.extract_strided_slice %82 {offsets = [0, 16], sizes = [2, 16], strides = [1, 1]} : vector<2x96xf32> to vector<2x16xf32>
    %84 = arith.mulf %83, %75 : vector<2x16xf32>
    %85 = vector.extract_strided_slice %82 {offsets = [0, 0], sizes = [2, 16], strides = [1, 1]} : vector<2x96xf32> to vector<2x16xf32>
    %86 = arith.addf %84, %85 : vector<2x16xf32>
    %87 = vector.extract_strided_slice %82 {offsets = [0, 32], sizes = [2, 16], strides = [1, 1]} : vector<2x96xf32> to vector<2x16xf32>
    %88 = arith.mulf %87, %86 : vector<2x16xf32>
    %c2_54 = arith.constant 2 : index
    %c0_55 = arith.constant 0 : index
    %c0_56 = arith.constant 0 : index
    %89 = vector.load %arg14[%c2_54, %c0_55, %c0_56] : memref<8x2x32xf32, #tpu.memory_space<vmem>>, vector<1x2x16xf32>
    %90 = vector.shape_cast %89 : vector<1x2x16xf32> to vector<2x16xf32>
    %91 = vector.shape_cast %88 : vector<2x16xf32> to vector<1x2x16xf32>
    tpu.vector_store %arg14[%c2_54, %c0_55, %c0_56], %91 {strides = array<i32>} : memref<8x2x32xf32, #tpu.memory_space<vmem>>, vector<1x2x16xf32>,
    %c3 = arith.constant 3 : index
    %c0_57 = arith.constant 0 : index
    %c0_58 = arith.constant 0 : index
    %92 = vector.load %arg13[%c3, %c0_57, %c0_58] : memref<8x2x96xf32, #tpu.memory_space<vmem>>, vector<1x2x96xf32>
    %93 = vector.shape_cast %92 : vector<1x2x96xf32> to vector<2x96xf32>
    %94 = vector.extract_strided_slice %93 {offsets = [0, 16], sizes = [2, 16], strides = [1, 1]} : vector<2x96xf32> to vector<2x16xf32>
    %95 = arith.mulf %94, %86 : vector<2x16xf32>
    %96 = vector.extract_strided_slice %93 {offsets = [0, 0], sizes = [2, 16], strides = [1, 1]} : vector<2x96xf32> to vector<2x16xf32>
    %97 = arith.addf %95, %96 : vector<2x16xf32>
    %98 = vector.extract_strided_slice %93 {offsets = [0, 32], sizes = [2, 16], strides = [1, 1]} : vector<2x96xf32> to vector<2x16xf32>
    %99 = arith.mulf %98, %97 : vector<2x16xf32>
    %c3_59 = arith.constant 3 : index
    %c0_60 = arith.constant 0 : index
    %c0_61 = arith.constant 0 : index
    %100 = vector.load %arg14[%c3_59, %c0_60, %c0_61] : memref<8x2x32xf32, #tpu.memory_space<vmem>>, vector<1x2x16xf32>
    %101 = vector.shape_cast %100 : vector<1x2x16xf32> to vector<2x16xf32>
    %102 = vector.shape_cast %99 : vector<2x16xf32> to vector<1x2x16xf32>
    tpu.vector_store %arg14[%c3_59, %c0_60, %c0_61], %102 {strides = array<i32>} : memref<8x2x32xf32, #tpu.memory_space<vmem>>, vector<1x2x16xf32>,
    %c4 = arith.constant 4 : index
    %c0_62 = arith.constant 0 : index
    %c0_63 = arith.constant 0 : index
    %103 = vector.load %arg13[%c4, %c0_62, %c0_63] : memref<8x2x96xf32, #tpu.memory_space<vmem>>, vector<1x2x96xf32>
    %104 = vector.shape_cast %103 : vector<1x2x96xf32> to vector<2x96xf32>
    %105 = vector.extract_strided_slice %104 {offsets = [0, 16], sizes = [2, 16], strides = [1, 1]} : vector<2x96xf32> to vector<2x16xf32>
    %106 = arith.mulf %105, %97 : vector<2x16xf32>
    %107 = vector.extract_strided_slice %104 {offsets = [0, 0], sizes = [2, 16], strides = [1, 1]} : vector<2x96xf32> to vector<2x16xf32>
    %108 = arith.addf %106, %107 : vector<2x16xf32>
    %109 = vector.extract_strided_slice %104 {offsets = [0, 32], sizes = [2, 16], strides = [1, 1]} : vector<2x96xf32> to vector<2x16xf32>
    %110 = arith.mulf %109, %108 : vector<2x16xf32>
    %c4_64 = arith.constant 4 : index
    %c0_65 = arith.constant 0 : index
    %c0_66 = arith.constant 0 : index
    %111 = vector.load %arg14[%c4_64, %c0_65, %c0_66] : memref<8x2x32xf32, #tpu.memory_space<vmem>>, vector<1x2x16xf32>
    %112 = vector.shape_cast %111 : vector<1x2x16xf32> to vector<2x16xf32>
    %113 = vector.shape_cast %110 : vector<2x16xf32> to vector<1x2x16xf32>
    tpu.vector_store %arg14[%c4_64, %c0_65, %c0_66], %113 {strides = array<i32>} : memref<8x2x32xf32, #tpu.memory_space<vmem>>, vector<1x2x16xf32>,
    %c5 = arith.constant 5 : index
    %c0_67 = arith.constant 0 : index
    %c0_68 = arith.constant 0 : index
    %114 = vector.load %arg13[%c5, %c0_67, %c0_68] : memref<8x2x96xf32, #tpu.memory_space<vmem>>, vector<1x2x96xf32>
    %115 = vector.shape_cast %114 : vector<1x2x96xf32> to vector<2x96xf32>
    %116 = vector.extract_strided_slice %115 {offsets = [0, 16], sizes = [2, 16], strides = [1, 1]} : vector<2x96xf32> to vector<2x16xf32>
    %117 = arith.mulf %116, %108 : vector<2x16xf32>
    %118 = vector.extract_strided_slice %115 {offsets = [0, 0], sizes = [2, 16], strides = [1, 1]} : vector<2x96xf32> to vector<2x16xf32>
    %119 = arith.addf %117, %118 : vector<2x16xf32>
    %120 = vector.extract_strided_slice %115 {offsets = [0, 32], sizes = [2, 16], strides = [1, 1]} : vector<2x96xf32> to vector<2x16xf32>
    %121 = arith.mulf %120, %119 : vector<2x16xf32>
    %c5_69 = arith.constant 5 : index
    %c0_70 = arith.constant 0 : index
    %c0_71 = arith.constant 0 : index
    %122 = vector.load %arg14[%c5_69, %c0_70, %c0_71] : memref<8x2x32xf32, #tpu.memory_space<vmem>>, vector<1x2x16xf32>
    %123 = vector.shape_cast %122 : vector<1x2x16xf32> to vector<2x16xf32>
    %124 = vector.shape_cast %121 : vector<2x16xf32> to vector<1x2x16xf32>
    tpu.vector_store %arg14[%c5_69, %c0_70, %c0_71], %124 {strides = array<i32>} : memref<8x2x32xf32, #tpu.memory_space<vmem>>, vector<1x2x16xf32>,
    %c6 = arith.constant 6 : index
    %c0_72 = arith.constant 0 : index
    %c0_73 = arith.constant 0 : index
    %125 = vector.load %arg13[%c6, %c0_72, %c0_73] : memref<8x2x96xf32, #tpu.memory_space<vmem>>, vector<1x2x96xf32>
    %126 = vector.shape_cast %125 : vector<1x2x96xf32> to vector<2x96xf32>
    %127 = vector.extract_strided_slice %126 {offsets = [0, 16], sizes = [2, 16], strides = [1, 1]} : vector<2x96xf32> to vector<2x16xf32>
    %128 = arith.mulf %127, %119 : vector<2x16xf32>
    %129 = vector.extract_strided_slice %126 {offsets = [0, 0], sizes = [2, 16], strides = [1, 1]} : vector<2x96xf32> to vector<2x16xf32>
    %130 = arith.addf %128, %129 : vector<2x16xf32>
    %131 = vector.extract_strided_slice %126 {offsets = [0, 32], sizes = [2, 16], strides = [1, 1]} : vector<2x96xf32> to vector<2x16xf32>
    %132 = arith.mulf %131, %130 : vector<2x16xf32>
    %c6_74 = arith.constant 6 : index
    %c0_75 = arith.constant 0 : index
    %c0_76 = arith.constant 0 : index
    %133 = vector.load %arg14[%c6_74, %c0_75, %c0_76] : memref<8x2x32xf32, #tpu.memory_space<vmem>>, vector<1x2x16xf32>
    %134 = vector.shape_cast %133 : vector<1x2x16xf32> to vector<2x16xf32>
    %135 = vector.shape_cast %132 : vector<2x16xf32> to vector<1x2x16xf32>
    tpu.vector_store %arg14[%c6_74, %c0_75, %c0_76], %135 {strides = array<i32>} : memref<8x2x32xf32, #tpu.memory_space<vmem>>, vector<1x2x16xf32>,
    %c7 = arith.constant 7 : index
    %c0_77 = arith.constant 0 : index
    %c0_78 = arith.constant 0 : index
    %136 = vector.load %arg13[%c7, %c0_77, %c0_78] : memref<8x2x96xf32, #tpu.memory_space<vmem>>, vector<1x2x96xf32>
    %137 = vector.shape_cast %136 : vector<1x2x96xf32> to vector<2x96xf32>
    %138 = vector.extract_strided_slice %137 {offsets = [0, 16], sizes = [2, 16], strides = [1, 1]} : vector<2x96xf32> to vector<2x16xf32>
    %139 = arith.mulf %138, %130 : vector<2x16xf32>
    %140 = vector.extract_strided_slice %137 {offsets = [0, 0], sizes = [2, 16], strides = [1, 1]} : vector<2x96xf32> to vector<2x16xf32>
    %141 = arith.addf %139, %140 : vector<2x16xf32>
    %142 = vector.extract_strided_slice %137 {offsets = [0, 32], sizes = [2, 16], strides = [1, 1]} : vector<2x96xf32> to vector<2x16xf32>
    %143 = arith.mulf %142, %141 : vector<2x16xf32>
    %c7_79 = arith.constant 7 : index
    %c0_80 = arith.constant 0 : index
    %c0_81 = arith.constant 0 : index
    %144 = vector.load %arg14[%c7_79, %c0_80, %c0_81] : memref<8x2x32xf32, #tpu.memory_space<vmem>>, vector<1x2x16xf32>
    %145 = vector.shape_cast %144 : vector<1x2x16xf32> to vector<2x16xf32>
    %146 = vector.shape_cast %143 : vector<2x16xf32> to vector<1x2x16xf32>
    tpu.vector_store %arg14[%c7_79, %c0_80, %c0_81], %146 {strides = array<i32>} : memref<8x2x32xf32, #tpu.memory_space<vmem>>, vector<1x2x16xf32>,
    %c7_82 = arith.constant 7 : index
    %c0_83 = arith.constant 0 : index
    %c0_84 = arith.constant 0 : index
    %147 = vector.load %arg13[%c7_82, %c0_83, %c0_84] : memref<8x2x96xf32, #tpu.memory_space<vmem>>, vector<1x2x96xf32>
    %148 = vector.shape_cast %147 : vector<1x2x96xf32> to vector<2x96xf32>
    %149 = vector.extract_strided_slice %148 {offsets = [0, 64], sizes = [2, 16], strides = [1, 1]} : vector<2x96xf32> to vector<2x16xf32>
    %150 = arith.mulf %149, %58 : vector<2x16xf32>
    %151 = vector.extract_strided_slice %148 {offsets = [0, 48], sizes = [2, 16], strides = [1, 1]} : vector<2x96xf32> to vector<2x16xf32>
    %152 = arith.addf %150, %151 : vector<2x16xf32>
    %153 = vector.extract_strided_slice %148 {offsets = [0, 80], sizes = [2, 16], strides = [1, 1]} : vector<2x96xf32> to vector<2x16xf32>
    %154 = arith.mulf %153, %152 : vector<2x16xf32>
    %c7_85 = arith.constant 7 : index
    %c0_86 = arith.constant 0 : index
    %c16_87 = arith.constant 16 : index
    %155 = vector.load %arg14[%c7_85, %c0_86, %c16_87] : memref<8x2x32xf32, #tpu.memory_space<vmem>>, vector<1x2x16xf32>
    %156 = vector.shape_cast %155 : vector<1x2x16xf32> to vector<2x16xf32>
    %157 = vector.shape_cast %154 : vector<2x16xf32> to vector<1x2x16xf32>
    tpu.vector_store %arg14[%c7_85, %c0_86, %c16_87], %157 {strides = array<i32>} : memref<8x2x32xf32, #tpu.memory_space<vmem>>, vector<1x2x16xf32>,
    %c6_88 = arith.constant 6 : index
    %c0_89 = arith.constant 0 : index
    %c0_90 = arith.constant 0 : index
    %158 = vector.load %arg13[%c6_88, %c0_89, %c0_90] : memref<8x2x96xf32, #tpu.memory_space<vmem>>, vector<1x2x96xf32>
    %159 = vector.shape_cast %158 : vector<1x2x96xf32> to vector<2x96xf32>
    %160 = vector.extract_strided_slice %159 {offsets = [0, 64], sizes = [2, 16], strides = [1, 1]} : vector<2x96xf32> to vector<2x16xf32>
    %161 = arith.mulf %160, %152 : vector<2x16xf32>
    %162 = vector.extract_strided_slice %159 {offsets = [0, 48], sizes = [2, 16], strides = [1, 1]} : vector<2x96xf32> to vector<2x16xf32>
    %163 = arith.addf %161, %162 : vector<2x16xf32>
    %164 = vector.extract_strided_slice %159 {offsets = [0, 80], sizes = [2, 16], strides = [1, 1]} : vector<2x96xf32> to vector<2x16xf32>
    %165 = arith.mulf %164, %163 : vector<2x16xf32>
    %c6_91 = arith.constant 6 : index
    %c0_92 = arith.constant 0 : index
    %c16_93 = arith.constant 16 : index
    %166 = vector.load %arg14[%c6_91, %c0_92, %c16_93] : memref<8x2x32xf32, #tpu.memory_space<vmem>>, vector<1x2x16xf32>
    %167 = vector.shape_cast %166 : vector<1x2x16xf32> to vector<2x16xf32>
    %168 = vector.shape_cast %165 : vector<2x16xf32> to vector<1x2x16xf32>
    tpu.vector_store %arg14[%c6_91, %c0_92, %c16_93], %168 {strides = array<i32>} : memref<8x2x32xf32, #tpu.memory_space<vmem>>, vector<1x2x16xf32>,
    %c5_94 = arith.constant 5 : index
    %c0_95 = arith.constant 0 : index
    %c0_96 = arith.constant 0 : index
    %169 = vector.load %arg13[%c5_94, %c0_95, %c0_96] : memref<8x2x96xf32, #tpu.memory_space<vmem>>, vector<1x2x96xf32>
    %170 = vector.shape_cast %169 : vector<1x2x96xf32> to vector<2x96xf32>
    %171 = vector.extract_strided_slice %170 {offsets = [0, 64], sizes = [2, 16], strides = [1, 1]} : vector<2x96xf32> to vector<2x16xf32>
    %172 = arith.mulf %171, %163 : vector<2x16xf32>
    %173 = vector.extract_strided_slice %170 {offsets = [0, 48], sizes = [2, 16], strides = [1, 1]} : vector<2x96xf32> to vector<2x16xf32>
    %174 = arith.addf %172, %173 : vector<2x16xf32>
    %175 = vector.extract_strided_slice %170 {offsets = [0, 80], sizes = [2, 16], strides = [1, 1]} : vector<2x96xf32> to vector<2x16xf32>
    %176 = arith.mulf %175, %174 : vector<2x16xf32>
    %c5_97 = arith.constant 5 : index
    %c0_98 = arith.constant 0 : index
    %c16_99 = arith.constant 16 : index
    %177 = vector.load %arg14[%c5_97, %c0_98, %c16_99] : memref<8x2x32xf32, #tpu.memory_space<vmem>>, vector<1x2x16xf32>
    %178 = vector.shape_cast %177 : vector<1x2x16xf32> to vector<2x16xf32>
    %179 = vector.shape_cast %176 : vector<2x16xf32> to vector<1x2x16xf32>
    tpu.vector_store %arg14[%c5_97, %c0_98, %c16_99], %179 {strides = array<i32>} : memref<8x2x32xf32, #tpu.memory_space<vmem>>, vector<1x2x16xf32>,
    %c4_100 = arith.constant 4 : index
    %c0_101 = arith.constant 0 : index
    %c0_102 = arith.constant 0 : index
    %180 = vector.load %arg13[%c4_100, %c0_101, %c0_102] : memref<8x2x96xf32, #tpu.memory_space<vmem>>, vector<1x2x96xf32>
    %181 = vector.shape_cast %180 : vector<1x2x96xf32> to vector<2x96xf32>
    %182 = vector.extract_strided_slice %181 {offsets = [0, 64], sizes = [2, 16], strides = [1, 1]} : vector<2x96xf32> to vector<2x16xf32>
    %183 = arith.mulf %182, %174 : vector<2x16xf32>
    %184 = vector.extract_strided_slice %181 {offsets = [0, 48], sizes = [2, 16], strides = [1, 1]} : vector<2x96xf32> to vector<2x16xf32>
    %185 = arith.addf %183, %184 : vector<2x16xf32>
    %186 = vector.extract_strided_slice %181 {offsets = [0, 80], sizes = [2, 16], strides = [1, 1]} : vector<2x96xf32> to vector<2x16xf32>
    %187 = arith.mulf %186, %185 : vector<2x16xf32>
    %c4_103 = arith.constant 4 : index
    %c0_104 = arith.constant 0 : index
    %c16_105 = arith.constant 16 : index
    %188 = vector.load %arg14[%c4_103, %c0_104, %c16_105] : memref<8x2x32xf32, #tpu.memory_space<vmem>>, vector<1x2x16xf32>
    %189 = vector.shape_cast %188 : vector<1x2x16xf32> to vector<2x16xf32>
    %190 = vector.shape_cast %187 : vector<2x16xf32> to vector<1x2x16xf32>
    tpu.vector_store %arg14[%c4_103, %c0_104, %c16_105], %190 {strides = array<i32>} : memref<8x2x32xf32, #tpu.memory_space<vmem>>, vector<1x2x16xf32>,
    %c3_106 = arith.constant 3 : index
    %c0_107 = arith.constant 0 : index
    %c0_108 = arith.constant 0 : index
    %191 = vector.load %arg13[%c3_106, %c0_107, %c0_108] : memref<8x2x96xf32, #tpu.memory_space<vmem>>, vector<1x2x96xf32>
    %192 = vector.shape_cast %191 : vector<1x2x96xf32> to vector<2x96xf32>
    %193 = vector.extract_strided_slice %192 {offsets = [0, 64], sizes = [2, 16], strides = [1, 1]} : vector<2x96xf32> to vector<2x16xf32>
    %194 = arith.mulf %193, %185 : vector<2x16xf32>
    %195 = vector.extract_strided_slice %192 {offsets = [0, 48], sizes = [2, 16], strides = [1, 1]} : vector<2x96xf32> to vector<2x16xf32>
    %196 = arith.addf %194, %195 : vector<2x16xf32>
    %197 = vector.extract_strided_slice %192 {offsets = [0, 80], sizes = [2, 16], strides = [1, 1]} : vector<2x96xf32> to vector<2x16xf32>
    %198 = arith.mulf %197, %196 : vector<2x16xf32>
    %c3_109 = arith.constant 3 : index
    %c0_110 = arith.constant 0 : index
    %c16_111 = arith.constant 16 : index
    %199 = vector.load %arg14[%c3_109, %c0_110, %c16_111] : memref<8x2x32xf32, #tpu.memory_space<vmem>>, vector<1x2x16xf32>
    %200 = vector.shape_cast %199 : vector<1x2x16xf32> to vector<2x16xf32>
    %201 = vector.shape_cast %198 : vector<2x16xf32> to vector<1x2x16xf32>
    tpu.vector_store %arg14[%c3_109, %c0_110, %c16_111], %201 {strides = array<i32>} : memref<8x2x32xf32, #tpu.memory_space<vmem>>, vector<1x2x16xf32>,
    %c2_112 = arith.constant 2 : index
    %c0_113 = arith.constant 0 : index
    %c0_114 = arith.constant 0 : index
    %202 = vector.load %arg13[%c2_112, %c0_113, %c0_114] : memref<8x2x96xf32, #tpu.memory_space<vmem>>, vector<1x2x96xf32>
    %203 = vector.shape_cast %202 : vector<1x2x96xf32> to vector<2x96xf32>
    %204 = vector.extract_strided_slice %203 {offsets = [0, 64], sizes = [2, 16], strides = [1, 1]} : vector<2x96xf32> to vector<2x16xf32>
    %205 = arith.mulf %204, %196 : vector<2x16xf32>
    %206 = vector.extract_strided_slice %203 {offsets = [0, 48], sizes = [2, 16], strides = [1, 1]} : vector<2x96xf32> to vector<2x16xf32>
    %207 = arith.addf %205, %206 : vector<2x16xf32>
    %208 = vector.extract_strided_slice %203 {offsets = [0, 80], sizes = [2, 16], strides = [1, 1]} : vector<2x96xf32> to vector<2x16xf32>
    %209 = arith.mulf %208, %207 : vector<2x16xf32>
    %c2_115 = arith.constant 2 : index
    %c0_116 = arith.constant 0 : index
    %c16_117 = arith.constant 16 : index
    %210 = vector.load %arg14[%c2_115, %c0_116, %c16_117] : memref<8x2x32xf32, #tpu.memory_space<vmem>>, vector<1x2x16xf32>
    %211 = vector.shape_cast %210 : vector<1x2x16xf32> to vector<2x16xf32>
    %212 = vector.shape_cast %209 : vector<2x16xf32> to vector<1x2x16xf32>
    tpu.vector_store %arg14[%c2_115, %c0_116, %c16_117], %212 {strides = array<i32>} : memref<8x2x32xf32, #tpu.memory_space<vmem>>, vector<1x2x16xf32>,
    %c1_118 = arith.constant 1 : index
    %c0_119 = arith.constant 0 : index
    %c0_120 = arith.constant 0 : index
    %213 = vector.load %arg13[%c1_118, %c0_119, %c0_120] : memref<8x2x96xf32, #tpu.memory_space<vmem>>, vector<1x2x96xf32>
    %214 = vector.shape_cast %213 : vector<1x2x96xf32> to vector<2x96xf32>
    %215 = vector.extract_strided_slice %214 {offsets = [0, 64], sizes = [2, 16], strides = [1, 1]} : vector<2x96xf32> to vector<2x16xf32>
    %216 = arith.mulf %215, %207 : vector<2x16xf32>
    %217 = vector.extract_strided_slice %214 {offsets = [0, 48], sizes = [2, 16], strides = [1, 1]} : vector<2x96xf32> to vector<2x16xf32>
    %218 = arith.addf %216, %217 : vector<2x16xf32>
    %219 = vector.extract_strided_slice %214 {offsets = [0, 80], sizes = [2, 16], strides = [1, 1]} : vector<2x96xf32> to vector<2x16xf32>
    %220 = arith.mulf %219, %218 : vector<2x16xf32>
    %c1_121 = arith.constant 1 : index
    %c0_122 = arith.constant 0 : index
    %c16_123 = arith.constant 16 : index
    %221 = vector.load %arg14[%c1_121, %c0_122, %c16_123] : memref<8x2x32xf32, #tpu.memory_space<vmem>>, vector<1x2x16xf32>
    %222 = vector.shape_cast %221 : vector<1x2x16xf32> to vector<2x16xf32>
    %223 = vector.shape_cast %220 : vector<2x16xf32> to vector<1x2x16xf32>
    tpu.vector_store %arg14[%c1_121, %c0_122, %c16_123], %223 {strides = array<i32>} : memref<8x2x32xf32, #tpu.memory_space<vmem>>, vector<1x2x16xf32>,
    %c0_124 = arith.constant 0 : index
    %c0_125 = arith.constant 0 : index
    %c0_126 = arith.constant 0 : index
    %224 = vector.load %arg13[%c0_124, %c0_125, %c0_126] : memref<8x2x96xf32, #tpu.memory_space<vmem>>, vector<1x2x96xf32>
    %225 = vector.shape_cast %224 : vector<1x2x96xf32> to vector<2x96xf32>
    %226 = vector.extract_strided_slice %225 {offsets = [0, 64], sizes = [2, 16], strides = [1, 1]} : vector<2x96xf32> to vector<2x16xf32>
    %227 = arith.mulf %226, %218 : vector<2x16xf32>
    %228 = vector.extract_strided_slice %225 {offsets = [0, 48], sizes = [2, 16], strides = [1, 1]} : vector<2x96xf32> to vector<2x16xf32>
    %229 = arith.addf %227, %228 : vector<2x16xf32>
    %230 = vector.extract_strided_slice %225 {offsets = [0, 80], sizes = [2, 16], strides = [1, 1]} : vector<2x96xf32> to vector<2x16xf32>
    %231 = arith.mulf %230, %229 : vector<2x16xf32>
    %c0_127 = arith.constant 0 : index
    %c0_128 = arith.constant 0 : index
    %c16_129 = arith.constant 16 : index
    %232 = vector.load %arg14[%c0_127, %c0_128, %c16_129] : memref<8x2x32xf32, #tpu.memory_space<vmem>>, vector<1x2x16xf32>
    %233 = vector.shape_cast %232 : vector<1x2x16xf32> to vector<2x16xf32>
    %234 = vector.shape_cast %231 : vector<2x16xf32> to vector<1x2x16xf32>
    tpu.vector_store %arg14[%c0_127, %c0_128, %c16_129], %234 {strides = array<i32>} : memref<8x2x32xf32, #tpu.memory_space<vmem>>, vector<1x2x16xf32>,
    %c0_130 = arith.constant 0 : index
    %c0_131 = arith.constant 0 : index
    %c0_132 = arith.constant 0 : index
    %235 = vector.load %arg14[%c0_130, %c0_131, %c0_132] : memref<8x2x32xf32, #tpu.memory_space<vmem>>, vector<8x2x32xf32>
    %c0_133 = arith.constant 0 : index
    %c0_134 = arith.constant 0 : index
    %236 = vector.load %arg4[%c0_133, %c0_134] : memref<1x32xf32, #tpu.memory_space<vmem>>, vector<1x32xf32>
    %237 = vector.shape_cast %236 : vector<1x32xf32> to vector<1x1x32xf32>
    %238 = vector.broadcast %237 : vector<1x1x32xf32> to vector<8x2x32xf32>
    %239 = arith.mulf %235, %238 : vector<8x2x32xf32>
    %cst_135 = arith.constant dense<0.000000e+00> : vector<8x2xf32>
    %240 = vector.multi_reduction <add>, %239, %cst_135 [2] : vector<8x2x32xf32> to vector<8x2xf32>
    %241 = vector.shape_cast %240 : vector<8x2xf32> to vector<8x2x1xf32>
    %c0_136 = arith.constant 0 : index
    %c0_137 = arith.constant 0 : index
    %242 = vector.load %arg5[%c0_136, %c0_137] : memref<1x1xf32, #tpu.memory_space<vmem>>, vector<1x1xf32>
    %243 = vector.shape_cast %242 : vector<1x1xf32> to vector<1x1x1xf32>
    %244 = vector.broadcast %243 : vector<1x1x1xf32> to vector<8x2x1xf32>
    %245 = arith.addf %241, %244 : vector<8x2x1xf32>
    %cst_138 = arith.constant dense<0xFF800000> : vector<2x1xf32>
    %246 = vector.multi_reduction <maximumf>, %245, %cst_138 [0] : vector<8x2x1xf32> to vector<2x1xf32>
    %247 = vector.shape_cast %246 : vector<2x1xf32> to vector<1x2x1xf32>
    %248 = vector.broadcast %247 : vector<1x2x1xf32> to vector<8x2x1xf32>
    %249 = arith.subf %245, %248 : vector<8x2x1xf32>
    %250 = math.exp %249 : vector<8x2x1xf32>
    %cst_139 = arith.constant dense<0.000000e+00> : vector<2x1xf32>
    %251 = vector.multi_reduction <add>, %250, %cst_139 [0] : vector<8x2x1xf32> to vector<2x1xf32>
    %252 = vector.shape_cast %251 : vector<2x1xf32> to vector<1x2x1xf32>
    %253 = tpu.reciprocal %252 {approx = true} : vector<1x2x1xf32> -> vector<1x2x1xf32>
    %254 = vector.broadcast %253 : vector<1x2x1xf32> to vector<8x2x1xf32>
    %255 = arith.mulf %250, %254 : vector<8x2x1xf32>
    %256 = vector.broadcast %255 : vector<8x2x1xf32> to vector<8x2x32xf32>
    %257 = arith.mulf %256, %235 : vector<8x2x32xf32>
    %cst_140 = arith.constant dense<0.000000e+00> : vector<2x32xf32>
    %258 = vector.multi_reduction <add>, %257, %cst_140 [0] : vector<8x2x32xf32> to vector<2x32xf32>
    %cst_141 = arith.constant dense<0xFF800000> : vector<2x32xf32>
    %259 = vector.multi_reduction <maximumf>, %235, %cst_141 [0] : vector<8x2x32xf32> to vector<2x32xf32>
    %cst_142 = arith.constant dense<0.000000e+00> : vector<2x32xf32>
    %260 = vector.multi_reduction <add>, %235, %cst_142 [0] : vector<8x2x32xf32> to vector<2x32xf32>
    %cst_143 = arith.constant 1.250000e-01 : f32
    %261 = vector.broadcast %cst_143 : f32 to vector<2x32xf32>
    %262 = arith.mulf %260, %261 : vector<2x32xf32>
    %263 = tpu.concatenate %258, %259, %262 in 1 : vector<2x32xf32>, vector<2x32xf32>, vector<2x32xf32> -> vector<2x96xf32>
    %264 = arith.truncf %263 : vector<2x96xf32> to vector<2x96xbf16>
    %c0_144 = arith.constant 0 : index
    %c0_145 = arith.constant 0 : index
    %265 = vector.load %arg6[%c0_144, %c0_145] : memref<96x32xbf16, #tpu.memory_space<vmem>>, vector<96x32xbf16>
    %cst_146 = arith.constant dense<0.000000e+00> : vector<2x32xf32>
    %266 = tpu.matmul %264, %265, %cst_146 {dimension_numbers = #tpu.dot_dimension_numbers<[1], [0], [0], [1], [0, 0, 1, 1], [], []>} : vector<2x96xbf16>, vector<96x32xbf16>, vector<2x32xf32> -> vector<2x32xf32>
    %c0_147 = arith.constant 0 : index
    %c0_148 = arith.constant 0 : index
    %267 = vector.load %arg7[%c0_147, %c0_148] : memref<1x32xf32, #tpu.memory_space<vmem>>, vector<1x32xf32>
    %268 = vector.broadcast %267 : vector<1x32xf32> to vector<2x32xf32>
    %269 = arith.addf %266, %268 : vector<2x32xf32>
    %cst_149 = arith.constant 0.000000e+00 : f32
    %270 = vector.broadcast %cst_149 : f32 to vector<2x32xf32>
    %271 = arith.maximumf %269, %270 : vector<2x32xf32>
    %272 = arith.truncf %271 : vector<2x32xf32> to vector<2x32xbf16>
    %c0_150 = arith.constant 0 : index
    %c0_151 = arith.constant 0 : index
    %273 = vector.load %arg8[%c0_150, %c0_151] : memref<32x16xbf16, #tpu.memory_space<vmem>>, vector<32x16xbf16>
    %cst_152 = arith.constant dense<0.000000e+00> : vector<2x16xf32>
    %274 = tpu.matmul %272, %273, %cst_152 {dimension_numbers = #tpu.dot_dimension_numbers<[1], [0], [0], [1], [0, 0, 1, 1], [], []>} : vector<2x32xbf16>, vector<32x16xbf16>, vector<2x16xf32> -> vector<2x16xf32>
    %c0_153 = arith.constant 0 : index
    %c0_154 = arith.constant 0 : index
    %275 = vector.load %arg9[%c0_153, %c0_154] : memref<1x16xf32, #tpu.memory_space<vmem>>, vector<1x16xf32>
    %276 = vector.broadcast %275 : vector<1x16xf32> to vector<2x16xf32>
    %277 = arith.addf %274, %276 : vector<2x16xf32>
    %cst_155 = arith.constant 0.000000e+00 : f32
    %278 = vector.broadcast %cst_155 : f32 to vector<2x16xf32>
    %279 = arith.maximumf %277, %278 : vector<2x16xf32>
    %280 = arith.truncf %279 : vector<2x16xf32> to vector<2x16xbf16>
    %c0_156 = arith.constant 0 : index
    %c0_157 = arith.constant 0 : index
    %281 = vector.load %arg10[%c0_156, %c0_157] : memref<16x4xbf16, #tpu.memory_space<vmem>>, vector<16x4xbf16>
    %cst_158 = arith.constant dense<0.000000e+00> : vector<2x4xf32>
    %282 = tpu.matmul %280, %281, %cst_158 {dimension_numbers = #tpu.dot_dimension_numbers<[1], [0], [0], [1], [0, 0, 1, 1], [], []>} : vector<2x16xbf16>, vector<16x4xbf16>, vector<2x4xf32> -> vector<2x4xf32>
    %c0_159 = arith.constant 0 : index
    %c0_160 = arith.constant 0 : index
    %283 = vector.load %arg11[%c0_159, %c0_160] : memref<1x4xf32, #tpu.memory_space<vmem>>, vector<1x4xf32>
    %284 = vector.broadcast %283 : vector<1x4xf32> to vector<2x4xf32>
    %285 = arith.addf %282, %284 : vector<2x4xf32>
    %c0_161 = arith.constant 0 : index
    %c0_162 = arith.constant 0 : index
    %286 = vector.load %arg12[%c0_161, %c0_162] : memref<2x4xf32, #tpu.memory_space<vmem>>, vector<2x4xf32>
    tpu.vector_store %arg12[%c0_161, %c0_162], %285 {strides = array<i32>} : memref<2x4xf32, #tpu.memory_space<vmem>>, vector<2x4xf32>,
    return
  }
  func.func @transform_0(%arg0: i32) -> (i32, i32, i32) {
    %c0_i32 = arith.constant 0 : i32
    %c0_i32_0 = arith.constant 0 : i32
    %c0_i32_1 = arith.constant 0 : i32
    return %c0_i32, %arg0, %c0_i32_0 : i32, i32, i32
  }
  func.func @transform_1(%arg0: i32) -> (i32, i32) {
    %c0_i32 = arith.constant 0 : i32
    %c0_i32_0 = arith.constant 0 : i32
    %c0_i32_1 = arith.constant 0 : i32
    return %c0_i32, %c0_i32_0 : i32, i32
  }
  func.func @transform_2(%arg0: i32) -> (i32, i32) {
    %c0_i32 = arith.constant 0 : i32
    %c0_i32_0 = arith.constant 0 : i32
    %c0_i32_1 = arith.constant 0 : i32
    return %c0_i32, %c0_i32_0 : i32, i32
  }
  func.func @transform_3(%arg0: i32) -> (i32, i32) {
    %c0_i32 = arith.constant 0 : i32
    %c0_i32_0 = arith.constant 0 : i32
    %c0_i32_1 = arith.constant 0 : i32
    return %c0_i32, %c0_i32_0 : i32, i32
  }
  func.func @transform_4(%arg0: i32) -> (i32, i32) {
    %c0_i32 = arith.constant 0 : i32
    %c0_i32_0 = arith.constant 0 : i32
    %c0_i32_1 = arith.constant 0 : i32
    return %c0_i32, %c0_i32_0 : i32, i32
  }
  func.func @transform_5(%arg0: i32) -> (i32, i32) {
    %c0_i32 = arith.constant 0 : i32
    %c0_i32_0 = arith.constant 0 : i32
    %c0_i32_1 = arith.constant 0 : i32
    return %c0_i32, %c0_i32_0 : i32, i32
  }
  func.func @transform_6(%arg0: i32) -> (i32, i32) {
    %c0_i32 = arith.constant 0 : i32
    %c0_i32_0 = arith.constant 0 : i32
    %c0_i32_1 = arith.constant 0 : i32
    return %c0_i32, %c0_i32_0 : i32, i32
  }
  func.func @transform_7(%arg0: i32) -> (i32, i32) {
    %c0_i32 = arith.constant 0 : i32
    %c0_i32_0 = arith.constant 0 : i32
    %c0_i32_1 = arith.constant 0 : i32
    return %c0_i32, %c0_i32_0 : i32, i32
  }
  func.func @transform_8(%arg0: i32) -> (i32, i32) {
    %c0_i32 = arith.constant 0 : i32
    %c0_i32_0 = arith.constant 0 : i32
    %c0_i32_1 = arith.constant 0 : i32
    return %c0_i32, %c0_i32_0 : i32, i32
  }
  func.func @transform_9(%arg0: i32) -> (i32, i32) {
    %c0_i32 = arith.constant 0 : i32
    %c0_i32_0 = arith.constant 0 : i32
    %c0_i32_1 = arith.constant 0 : i32
    return %c0_i32, %c0_i32_0 : i32, i32
  }
  func.func @transform_10(%arg0: i32) -> (i32, i32) {
    %c0_i32 = arith.constant 0 : i32
    %c0_i32_0 = arith.constant 0 : i32
    %c0_i32_1 = arith.constant 0 : i32
    return %c0_i32, %c0_i32_0 : i32, i32
  }
  func.func @transform_11(%arg0: i32) -> (i32, i32) {
    %c0_i32 = arith.constant 0 : i32
    %c0_i32_0 = arith.constant 0 : i32
    return %arg0, %c0_i32 : i32, i32
  }
}

</mosaic_0001>

<bundles_post_ra>
// kernel: model_forward_pallas.1
= control target key start
LH: loop header
LB: loop body
LE: loop exit
PB: predicated region body
PF: predicated region fallthrough
CT: control target
= control target key end

     0   :  { %s2285_s0 = inlined_call_operand.vmem [shape: f32[8,2,16], index: 0, kind: input, shape index: {}]   ;;  %s2286_s1 = inlined_call_operand.vmem [shape: bf16[16,192], index: 1, kind: input, shape index: {}]   ;;  %s2287_s2 = inlined_call_operand.vmem [shape: f32[1,96], index: 2, kind: input, shape index: {}]   ;;  %s2288_s3 = inlined_call_operand.vmem [shape: f32[1,32], index: 3, kind: input, shape index: {}]   ;;  %s2289_s4 = inlined_call_operand.<no memory space> [shape: f32[1,1], index: 4, kind: input, shape index: {}]   ;;  %s2290_s5 = inlined_call_operand.vmem [shape: bf16[96,32], index: 5, kind: input, shape index: {}]   ;;  %s2291_s6 = inlined_call_operand.vmem [shape: f32[1,32], index: 6, kind: input, shape index: {}]   ;;  %s2292_s7 = inlined_call_operand.vmem [shape: bf16[32,16], index: 7, kind: input, shape index: {}]   ;;  %s2293_s8 = inlined_call_operand.vmem [shape: f32[1,16], index: 8, kind: input, shape index: {}]   ;;  %s2294_s9 = inlined_call_operand.vmem [shape: bf16[16,4], index: 9, kind: input, shape index: {}]   ;;  %s2295_s10 = inlined_call_operand.vmem [shape: f32[1,4], index: 10, kind: input, shape index: {}]   ;;  %s2296_s11 = inlined_call_operand.hbm [shape: f32[2,4], index: 11, kind: output, shape index: {}]  }
   0x1   :  { %v16_v0 = vstv %s2289_s4 }
   0x2   :  { %17 = vst [vmem:[#allocation4] sm:$0x1] %v16_v0 }
   0x3   :  { %v1553_v1 = vld [vmem:[%s2286_s1 + $0x4] ss:$8 sps:$4 sm:$0xff]   ;;  %v63_v2 = vlaneseq  ;;  %v1555_v3 = vld [vmem:[%s2286_s1] ss:$8 sps:$4 sm:$0xff]   ;;  %v1655_v4 = vmov 0  }
   0x4   :  { %143 = vmatprep.mubr.bf16.mxu0 %v1655_v4  ;;  %v42_v5 = vld [vmem:[%s2285_s0] sm:$0x3]  ;;  %1552 = vset.pattern.permute.xlu1 %v1655_v4  ;;  %v43_v6 = vld [vmem:[%s2285_s0 + $0x2] sm:$0x3]  ;;  %v44_v7 = vld [vmem:[%s2285_s0 + $0x4] sm:$0x3] }
   0x5   :  { %111 = vmatprep.subr.bf16.mxu0 %v1553_v1  ;;  %v45_v8 = vld [vmem:[%s2285_s0 + $0x6] sm:$0x3]  ;;  %1551 = vset.pattern.permute.xlu0 %v1655_v4  ;;  %v46_v9 = vld [vmem:[%s2285_s0 + $0x8] sm:$0x3]  ;;  %v47_v10 = vld [vmem:[%s2285_s0 + $0xa] sm:$0x3]  ;;  %v58_v16 = vcombine.low %v42_v5, %v43_v6 }
   0x6   :  { %112 = vmatpush1.bf16.msra.mxu0 %v1555_v3  ;;  %v48_v11 = vld [vmem:[%s2285_s0 + $0xc] sm:$0x3]  ;;  %v49_v12 = vld [vmem:[%s2285_s0 + $0xe] sm:$0x3]  ;;  %v64_v13 = vshrl.u32 %v63_v2, 7  ;;  %v59_v17 = vcombine.low %v44_v7, %v45_v8  ;;  %v75_v19 = vcombine.low %v46_v9, %v47_v10 }
   0x7   :  { %v1656_v14 = vmov 1983009808   ;;  %v76_v20 = vcombine.low %v48_v11, %v49_v12  ;;  %v1763_v21 = vld [vmem:[%s2287_s2] ss:$0 sm:$0xff] }
   0x8   :  { %v61_v15 = vunpack.c.l.s4 %v1656_v14 }
   0xa   :  { %v62_v18 = vunpack.c.0.s8 %v61_v15 }
   0xc   :  { %v1765_v22 = vsub.s32 %v62_v18, %v64_v13 }
   0xe   :  { %v66_v23 = vrot.slane %v58_v16, %v1765_v22  ;;  %v73_v24 = vrot.slane %v59_v17, %v1765_v22  ;;  %v83_v25 = vrot.slane %v75_v19, %v1765_v22  ;;  %v90_v26 = vrot.slane %v76_v20, %v1765_v22 }
   0xf   :  { %18 = vsyncpa [#allocation6], 0  ;;  %v232_v27 = vrot.slane %v1763_v21, %v1765_v22  ;;  %vm107_vm0 = vcmask 130048   ;;  %s1657_s0 = smov 48   ;;  %vm236_vm1 = vcmask 392192   ;;  %s1658_s2 = smov 80  }
  0x10   :  { %v74_v28 = vcombine.low %v66_v23, %v73_v24  ;;  %v91_v29 = vcombine.low %v83_v25, %v90_v26  ;;  %vm217_vm2 = vcmask 386048   ;;  %s1659_s20 = smov 32   ;;  %vm351_vm3 = vcmask 654336   ;;  %s1660_s21 = smov 16  }
  0x11   :  { %233 = vrot.lane.b32.xlu0 %v232_v27, %s1657_s0  ;;  %vm368_vm4 = vcmask 779648   ;;  %s1661_s22 = smov 112   ;;  %vm669_vm5 = vcmask 123904   ;;  %vm678_vm6 = vcmask 386176   ;;  %vm687_vm7 = vcmask 517504   ;;  %s1662_s23 = smov 96  }
  0x12   :  { %v94_v30 = vpack.c.bf16 %v91_v29, %v74_v28  ;;  %vm696_vm8 = vcmask 779776   ;;  %s1663_s24 = smov 64   ;;  %vm870_vm9 = vcmask 255104   ;;  %vm1014_vm10 = vcmask 254976  }
  0x13   :  { %vm1054_vm11 = vcmask 1024   ;;  %vm1665_vm12 = vmmov 0   ;;  %vm1220_vm13 = vcmask 261120   ;;  %vm1222_vm14 = vcmask 523264  }
  0x14   :  { %1470 = vmatmul.mubr.msk.bf16.vlgmr.msra.gmra.mrb[0].mxu0 %vm107_vm0, %v94_v30  ;;  %vm1280_vm15 = vcmask 785408  }
  0x83   :  { %v234_v31 = vpop.permute.xlu0 %233 }
  0x84   :  { %v235_v32 = vrot.slane %v234_v31, 6 }
  0x86   :  { %v1774_v38 = vsel %vm236_vm1, %v235_v32, %v234_v31  ;;  %vm1452_vm1 = vcmask 25600  }
  0xe7   :  { %v145_v33 = vpop.f32.mrb[0].mxu0 }
  0xe8   :  { %v147_v34 = vpop.f32.mrb[1].mxu0 }
  0xe9   :  { %v158_v35 = vcombine.low %v145_v33, %v147_v34  ;;  %v159_v36 = vcombine.high %v145_v33, %v147_v34  ;;  %v149_v37 = vpop.f32.mrb[2].mxu0 }
  0xea   :  { %v151_v39 = vpop.f32.mrb[3].mxu0 }
  0xeb   :  { %v166_v40 = vrot.slane %v158_v35, %v1765_v22  ;;  %v1778_v41 = vrot.slane %v159_v36, %v1765_v22  ;;  %v176_v42 = vcombine.low %v149_v37, %v151_v39  ;;  %v177_v43 = vcombine.high %v149_v37, %v151_v39 }
  0xed   :  { %v391_v44 = vrot.slane %v166_v40, %v1765_v22  ;;  %v241_v45 = vadd.f32 %v1774_v38, %v1778_v41  ;;  %v174_v46 = vcombine.high %v166_v40, %v166_v40  ;;  %v1786_v48 = vrot.slane %v176_v42, %v1765_v22 }
  0xee   :  { %v239_v50 = vadd.f32 %v1774_v38, %v166_v40  ;;  %v1791_v51 = vrot.slane %v177_v43, %v1765_v22  ;;  %v1798_v53 = vcombine.high %v1778_v41, %v1778_v41  ;;  %v211_v58 = vadd.f32 %v1763_v21, %v1778_v41 }
  0xef   :  { %434 = vrot.lane.b32.xlu1 %v391_v44, %s1658_s2  ;;  %v240_v47 = vadd.f32 %v1774_v38, %v174_v46  ;;  %v277_v49 = vrot.slane %v241_v45, %v1765_v22  ;;  %v192_v55 = vcombine.high %v1786_v48, %v1786_v48  ;;  %v209_v60 = vadd.f32 %v1763_v21, %v166_v40 }
  0xf0   :  { %v261_v54 = vrot.slane %v239_v50, %v1765_v22  ;;  %v1805_v57 = vcombine.high %v1791_v51, %v1791_v51  ;;  %v245_v59 = vadd.f32 %v1774_v38, %v1791_v51  ;;  %v215_v61 = vadd.f32 %v1763_v21, %v1791_v51  ;;  %220 = vst.msk [vmem:[#allocation2 + $0x4] sm:$0x3] %vm217_vm2, %v211_v58 }
  0xf1   :  { %v269_v52 = vrot.slane %v240_v47, %v1765_v22  ;;  %v278_v56 = vcombine.high %v277_v49, %v277_v49  ;;  %v212_v62 = vadd.f32 %v1763_v21, %v1798_v53  ;;  %v398_v63 = vrot.slane %v174_v46, %v1765_v22  ;;  %218 = vst.msk [vmem:[#allocation2] sm:$0x3] %vm217_vm2, %v209_v60 }
  0xf2   :  { %v210_v0 = vadd.f32 %v1763_v21, %v174_v46  ;;  %v213_v1 = vadd.f32 %v1763_v21, %v1786_v48  ;;  %v214_v2 = vadd.f32 %v1763_v21, %v192_v55  ;;  %v262_v3 = vcombine.high %v261_v54, %v261_v54  ;;  %224 = vst.msk [vmem:[#allocation2 + $0xc] sm:$0x3] %vm217_vm2, %v215_v61 }
  0xf3   :  { %327 = vrot.lane.b32.xlu1 %v277_v49, %s1658_s2  ;;  %323 = vrot.lane.b32.xlu0 %v269_v52, %s1658_s2  ;;  %221 = vst.msk [vmem:[#allocation2 + $0x6] sm:$0x3] %vm217_vm2, %v212_v62  ;;  %v216_v4 = vadd.f32 %v1763_v21, %v1805_v57  ;;  %v309_v5 = vrot.slane %v245_v59, %v1765_v22 }
  0xf4   :  { %219 = vst.msk [vmem:[#allocation2 + $0x2] sm:$0x3] %vm217_vm2, %v210_v0  ;;  %222 = vst.msk [vmem:[#allocation2 + $0x8] sm:$0x3] %vm217_vm2, %v213_v1  ;;  %v242_v6 = vadd.f32 %v1774_v38, %v1798_v53  ;;  %v426_v7 = vrot.slane %v192_v55, %v1765_v22  ;;  %v243_v9 = vadd.f32 %v1774_v38, %v1786_v48 }
  0xf5   :  { %223 = vst.msk [vmem:[#allocation2 + $0xa] sm:$0x3] %vm217_vm2, %v214_v2  ;;  %225 = vst.msk [vmem:[#allocation2 + $0xe] sm:$0x3] %vm217_vm2, %v216_v4  ;;  %v310_v10 = vcombine.high %v309_v5, %v309_v5  ;;  %v244_v13 = vadd.f32 %v1774_v38, %v192_v55  ;;  %v270_v14 = vcombine.high %v269_v52, %v269_v52 }
  0xf6   :  { %v285_v8 = vrot.slane %v242_v6, %v1765_v22  ;;  %v293_v11 = vrot.slane %v243_v9, %v1765_v22  ;;  %v246_v17 = vadd.f32 %v1774_v38, %v1805_v57  ;;  %v476_v21 = vcombine.high %v398_v63, %v398_v63 }
  0xf7   :  { %319 = vrot.lane.b32.xlu1 %v261_v54, %s1658_s2  ;;  %329 = vrot.lane.b32.xlu0 %v278_v56, %s1658_s2  ;;  %v301_v16 = vrot.slane %v244_v13, %v1765_v22  ;;  %v419_v23 = vrot.slane %v1786_v48, %v1765_v22  ;;  %v405_v24 = vrot.slane %v1778_v41, %v1765_v22 }
  0xf8   :  { %v286_v12 = vcombine.high %v285_v8, %v285_v8  ;;  %v294_v15 = vcombine.high %v293_v11, %v293_v11  ;;  %v317_v19 = vrot.slane %v246_v17, %v1765_v22  ;;  %v433_v25 = vrot.slane %v1791_v51, %v1765_v22 }
  0xf9   :  { %v302_v18 = vcombine.high %v301_v16, %v301_v16  ;;  %v477_v26 = vcombine.high %v405_v24, %v405_v24  ;;  %v412_v27 = vrot.slane %v1798_v53, %v1765_v22  ;;  %v488_v28 = vrot.slane %v1805_v57, %v1765_v22 }
  0xfa   :  { %v318_v20 = vcombine.high %v317_v19, %v317_v19  ;;  %v479_v31 = vcombine.high %v419_v23, %v419_v23  ;;  %v481_v32 = vcombine.high %v433_v25, %v433_v25  ;;  %v480_v33 = vcombine.high %v426_v7, %v426_v7 }
  0xfb   :  { %436 = vrot.lane.b32.xlu1 %v398_v63, %s1658_s2  ;;  %321 = vrot.lane.b32.xlu0 %v262_v3, %s1658_s2  ;;  %v478_v29 = vcombine.high %v412_v27, %v412_v27  ;;  %v489_v30 = vcombine.high %v488_v28, %v488_v28 }
  0xff   :  { %343 = vrot.lane.b32.xlu1 %v309_v5, %s1658_s2  ;;  %444 = vrot.lane.b32.xlu0 %v426_v7, %s1658_s2 }
 0x103   :  { %331 = vrot.lane.b32.xlu1 %v285_v8, %s1658_s2  ;;  %345 = vrot.lane.b32.xlu0 %v310_v10, %s1658_s2 }
 0x107   :  { %335 = vrot.lane.b32.xlu1 %v293_v11, %s1658_s2  ;;  %333 = vrot.lane.b32.xlu0 %v286_v12, %s1658_s2 }
 0x10b   :  { %325 = vrot.lane.b32.xlu1 %v270_v14, %s1658_s2  ;;  %337 = vrot.lane.b32.xlu0 %v294_v15, %s1658_s2 }
 0x10f   :  { %339 = vrot.lane.b32.xlu1 %v301_v16, %s1658_s2  ;;  %341 = vrot.lane.b32.xlu0 %v302_v18, %s1658_s2 }
 0x113   :  { %347 = vrot.lane.b32.xlu1 %v317_v19, %s1658_s2  ;;  %349 = vrot.lane.b32.xlu0 %v318_v20, %s1658_s2 }
 0x117   :  { %490 = vrot.lane.b32.xlu1 %v476_v21, %s1659_s20  ;;  %442 = vrot.lane.b32.xlu0 %v419_v23, %s1658_s2 }
 0x11b   :  { %438 = vrot.lane.b32.xlu1 %v405_v24, %s1658_s2  ;;  %446 = vrot.lane.b32.xlu0 %v433_v25, %s1658_s2 }
 0x11f   :  { %492 = vrot.lane.b32.xlu1 %v477_v26, %s1659_s20  ;;  %440 = vrot.lane.b32.xlu0 %v412_v27, %s1658_s2 }
 0x123   :  { %494 = vrot.lane.b32.xlu1 %v478_v29, %s1659_s20  ;;  %502 = vrot.lane.b32.xlu0 %v489_v30, %s1659_s20 }
 0x127   :  { %496 = vrot.lane.b32.xlu1 %v479_v31, %s1659_s20  ;;  %500 = vrot.lane.b32.xlu0 %v481_v32, %s1659_s20 }
 0x12b   :  { %498 = vrot.lane.b32.xlu0 %v480_v33, %s1659_s20 }
 0x161   :  { %v435_v22 = vpop.permute.xlu1 %434 }
 0x165   :  { %v328_v34 = vpop.permute.xlu1 %327  ;;  %v324_v35 = vpop.permute.xlu0 %323 }
 0x169   :  { %v320_v36 = vpop.permute.xlu1 %319  ;;  %v330_v37 = vpop.permute.xlu0 %329 }
 0x16a   :  { %v354_v38 = vsel %vm351_vm3, %v328_v34, %v330_v37 }
 0x16b   :  { %371 = vst.msk [vmem:[#allocation2 + $0x4] sm:$0x3] %vm368_vm4, %v354_v38 }
 0x16d   :  { %v437_v39 = vpop.permute.xlu1 %436  ;;  %v322_v40 = vpop.permute.xlu0 %321 }
 0x16e   :  { %v352_v41 = vsel %vm351_vm3, %v320_v36, %v322_v40 }
 0x16f   :  { %369 = vst.msk [vmem:[#allocation2] sm:$0x3] %vm368_vm4, %v352_v41 }
 0x171   :  { %v344_v42 = vpop.permute.xlu1 %343  ;;  %v445_v43 = vpop.permute.xlu0 %444 }
 0x172   :  { %v379_v44 = vld [vmem:[#allocation2 + $0x4] sm:$0x3] }
 0x173   :  { %v456_v45 = vadd.f32 %v437_v39, %v379_v44 }
 0x175   :  { %v332_v46 = vpop.permute.xlu1 %331  ;;  %463 = vst.msk [vmem:[#allocation2 + $0x4] sm:$0x3] %vm217_vm2, %v456_v45  ;;  %v346_v47 = vpop.permute.xlu0 %345 }
 0x176   :  { %v358_v48 = vsel %vm351_vm3, %v344_v42, %v346_v47  ;;  %v469_v2 = vld [vmem:[#allocation2] sm:$0x3] }
 0x177   :  { %375 = vst.msk [vmem:[#allocation2 + $0xc] sm:$0x3] %vm368_vm4, %v358_v48 }
 0x179   :  { %v336_v49 = vpop.permute.xlu1 %335  ;;  %v334_v50 = vpop.permute.xlu0 %333 }
 0x17a   :  { %v355_v51 = vsel %vm351_vm3, %v332_v46, %v334_v50 }
 0x17b   :  { %372 = vst.msk [vmem:[#allocation2 + $0x6] sm:$0x3] %vm368_vm4, %v355_v51 }
 0x17c   :  { %v471_v21 = vld [vmem:[#allocation2 + $0x4] sm:$0x3] }
 0x17d   :  { %v326_v52 = vpop.permute.xlu1 %325  ;;  %v338_v54 = vpop.permute.xlu0 %337 }
 0x17e   :  { %v353_v53 = vsel %vm351_vm3, %v324_v35, %v326_v52  ;;  %v383_v55 = vld [vmem:[#allocation2 + $0xc] sm:$0x3]  ;;  %v356_v56 = vsel %vm351_vm3, %v336_v49, %v338_v54 }
 0x17f   :  { %370 = vst.msk [vmem:[#allocation2 + $0x2] sm:$0x3] %vm368_vm4, %v353_v53  ;;  %v460_v57 = vadd.f32 %v445_v43, %v383_v55  ;;  %373 = vst.msk [vmem:[#allocation2 + $0x8] sm:$0x3] %vm368_vm4, %v356_v56 }
 0x181   :  { %v340_v58 = vpop.permute.xlu1 %339  ;;  %467 = vst.msk [vmem:[#allocation2 + $0xc] sm:$0x3] %vm217_vm2, %v460_v57  ;;  %v342_v59 = vpop.permute.xlu0 %341 }
 0x182   :  { %v357_v60 = vsel %vm351_vm3, %v340_v58, %v342_v59  ;;  %v380_v8 = vld [vmem:[#allocation2 + $0x6] sm:$0x3] }
 0x183   :  { %374 = vst.msk [vmem:[#allocation2 + $0xa] sm:$0x3] %vm368_vm4, %v357_v60 }
 0x185   :  { %v348_v61 = vpop.permute.xlu1 %347  ;;  %v350_v63 = vpop.permute.xlu0 %349 }
 0x186   :  { %v378_v62 = vld [vmem:[#allocation2 + $0x2] sm:$0x3]  ;;  %v359_v1 = vsel %vm351_vm3, %v348_v61, %v350_v63  ;;  %v381_v17 = vld [vmem:[#allocation2 + $0x8] sm:$0x3] }
 0x187   :  { %v455_v0 = vadd.f32 %v435_v22, %v378_v62  ;;  %376 = vst.msk [vmem:[#allocation2 + $0xe] sm:$0x3] %vm368_vm4, %v359_v1 }
 0x188   :  { %v475_v25 = vld [vmem:[#allocation2 + $0xc] sm:$0x3] }
 0x189   :  { %462 = vst.msk [vmem:[#allocation2 + $0x2] sm:$0x3] %vm217_vm2, %v455_v0  ;;  %v491_v3 = vpop.permute.xlu1 %490  ;;  %v443_v5 = vpop.permute.xlu0 %442 }
 0x18a   :  { %v511_v4 = vadd.f32 %v491_v3, %v469_v2  ;;  %v382_v6 = vld [vmem:[#allocation2 + $0xa] sm:$0x3] }
 0x18b   :  { %v459_v7 = vadd.f32 %v443_v5, %v382_v6 }
 0x18c   :  { %518 = vst.msk [vmem:[#allocation2] sm:$0x3] %vm368_vm4, %v511_v4 }
 0x18d   :  { %v439_v9 = vpop.permute.xlu1 %438  ;;  %466 = vst.msk [vmem:[#allocation2 + $0xa] sm:$0x3] %vm217_vm2, %v459_v7  ;;  %v447_v11 = vpop.permute.xlu0 %446 }
 0x18e   :  { %v457_v10 = vadd.f32 %v439_v9, %v380_v8  ;;  %v384_v12 = vld [vmem:[#allocation2 + $0xe] sm:$0x3] }
 0x18f   :  { %v461_v13 = vadd.f32 %v447_v11, %v384_v12 }
 0x190   :  { %464 = vst.msk [vmem:[#allocation2 + $0x6] sm:$0x3] %vm217_vm2, %v457_v10  ;;  %v470_v14 = vld [vmem:[#allocation2 + $0x2] sm:$0x3] }
 0x191   :  { %v493_v15 = vpop.permute.xlu1 %492  ;;  %468 = vst.msk [vmem:[#allocation2 + $0xe] sm:$0x3] %vm217_vm2, %v461_v13  ;;  %v441_v18 = vpop.permute.xlu0 %440 }
 0x192   :  { %v512_v16 = vadd.f32 %v493_v15, %v470_v14  ;;  %v458_v19 = vadd.f32 %v441_v18, %v381_v17 }
 0x193   :  { %v525_v20 = vld [vmem:[#allocation2] sm:$0x3] }
 0x194   :  { %519 = vst.msk [vmem:[#allocation2 + $0x2] sm:$0x3] %vm368_vm4, %v512_v16  ;;  %1565 = vtanh.f32 %v525_v20  ;;  %v474_v33 = vld [vmem:[#allocation2 + $0xa] sm:$0x3]  ;;  %v1472_v51 = vmul.f32 -1.442695, %v525_v20 }
 0x195   :  { %465 = vst.msk [vmem:[#allocation2 + $0x8] sm:$0x3] %vm217_vm2, %v458_v19  ;;  %v495_v23 = vpop.permute.xlu1 %494  ;;  %v503_v26 = vpop.permute.xlu0 %502 }
 0x196   :  { %v513_v24 = vadd.f32 %v495_v23, %v471_v21  ;;  %v517_v27 = vadd.f32 %v503_v26, %v475_v25 }
 0x197   :  { %v472_v28 = vld [vmem:[#allocation2 + $0x6] sm:$0x3] }
 0x198   :  { %520 = vst.msk [vmem:[#allocation2 + $0x4] sm:$0x3] %vm368_vm4, %v513_v24  ;;  %524 = vst.msk [vmem:[#allocation2 + $0xc] sm:$0x3] %vm368_vm4, %v517_v27  ;;  %v532_v30 = vld [vmem:[#allocation2 + $0xe] sm:$0x3] }
 0x199   :  { %v497_v29 = vpop.permute.xlu1 %496  ;;  %v501_v32 = vpop.permute.xlu0 %500  ;;  %1567 = vtanh.f32 %v532_v30  ;;  %v1479_v52 = vmul.f32 -1.442695, %v532_v30 }
 0x19a   :  { %v514_v31 = vadd.f32 %v497_v29, %v472_v28  ;;  %v516_v22 = vadd.f32 %v501_v32, %v474_v33 }
 0x19b   :  { %v526_v34 = vld [vmem:[#allocation2 + $0x2] sm:$0x3] }
 0x19c   :  { %521 = vst.msk [vmem:[#allocation2 + $0x6] sm:$0x3] %vm368_vm4, %v514_v31  ;;  %1569 = vtanh.f32 %v526_v34  ;;  %523 = vst.msk [vmem:[#allocation2 + $0xa] sm:$0x3] %vm368_vm4, %v516_v22  ;;  %v473_v36 = vld [vmem:[#allocation2 + $0x8] sm:$0x3] }
 0x19d   :  { %v499_v37 = vpop.permute.xlu0 %498  ;;  %v1473_v53 = vmul.f32 -1.442695, %v526_v34 }
 0x19e   :  { %v1566_v35 = vpop.eup %1565  ;;  %v515_v38 = vadd.f32 %v499_v37, %v473_v36 }
 0x19f   :  { %605 = vrot.lane.b32.xlu1 %v1566_v35, %s1660_s21  ;;  %v527_v39 = vld [vmem:[#allocation2 + $0x4] sm:$0x3]  ;;  %v531_v40 = vld [vmem:[#allocation2 + $0xc] sm:$0x3] }
 0x1a0   :  { %1571 = vtanh.f32 %v527_v39  ;;  %522 = vst.msk [vmem:[#allocation2 + $0x8] sm:$0x3] %vm368_vm4, %v515_v38  ;;  %v1474_v55 = vmul.f32 -1.442695, %v527_v39  ;;  %v1478_v56 = vmul.f32 -1.442695, %v531_v40 }
 0x1a1   :  { %1573 = vtanh.f32 %v531_v40 }
 0x1a3   :  { %v528_v41 = vld [vmem:[#allocation2 + $0x6] sm:$0x3]  ;;  %v1568_v42 = vpop.eup %1567  ;;  %v530_v43 = vld [vmem:[#allocation2 + $0xa] sm:$0x3] }
 0x1a4   :  { %1575 = vtanh.f32 %v528_v41  ;;  %619 = vrot.lane.b32.xlu0 %v1568_v42, %s1660_s21  ;;  %v1475_v58 = vmul.f32 -1.442695, %v528_v41  ;;  %v1477_v59 = vmul.f32 -1.442695, %v530_v43 }
 0x1a5   :  { %1577 = vtanh.f32 %v530_v43 }
 0x1a6   :  { %v1570_v44 = vpop.eup %1569 }
 0x1a7   :  { %607 = vrot.lane.b32.xlu1 %v1570_v44, %s1660_s21  ;;  %v529_v45 = vld [vmem:[#allocation2 + $0x8] sm:$0x3] }
 0x1a8   :  { %1579 = vtanh.f32 %v529_v45  ;;  %v1476_v61 = vmul.f32 -1.442695, %v529_v45 }
 0x1a9   :  { %1581 = vpow2.f32 %v1472_v51 }
 0x1aa   :  { %v1572_v46 = vpop.eup %1571  ;;  %1583 = vpow2.f32 %v1479_v52 }
 0x1ab   :  { %v1574_v47 = vpop.eup %1573  ;;  %609 = vrot.lane.b32.xlu1 %v1572_v46, %s1660_s21  ;;  %1585 = vpow2.f32 %v1473_v53 }
 0x1ac   :  { %617 = vrot.lane.b32.xlu0 %v1574_v47, %s1660_s21  ;;  %1587 = vpow2.f32 %v1474_v55 }
 0x1ad   :  { %1589 = vpow2.f32 %v1478_v56 }
 0x1ae   :  { %v1576_v48 = vpop.eup %1575 }
 0x1af   :  { %v1578_v49 = vpop.eup %1577  ;;  %611 = vrot.lane.b32.xlu1 %v1576_v48, %s1660_s21 }
 0x1b0   :  { %615 = vrot.lane.b32.xlu0 %v1578_v49, %s1660_s21 }
 0x1b2   :  { %v1580_v50 = vpop.eup %1579 }
 0x1b3   :  { %v1582_v54 = vpop.eup %1581 }
 0x1b4   :  { %613 = vrot.lane.b32.xlu0 %v1580_v50, %s1660_s21  ;;  %v565_v57 = vadd.f32 1.0, %v1582_v54  ;;  %v1584_v60 = vpop.eup %1583 }
 0x1b5   :  { %v1586_v62 = vpop.eup %1585  ;;  %v572_v63 = vadd.f32 1.0, %v1584_v60 }
 0x1b6   :  { %1591 = vrcp.f32 %v565_v57  ;;  %v566_v0 = vadd.f32 1.0, %v1586_v62  ;;  %v1588_v1 = vpop.eup %1587 }
 0x1b7   :  { %1593 = vpow2.f32 %v1475_v58  ;;  %v1590_v2 = vpop.eup %1589  ;;  %v567_v4 = vadd.f32 1.0, %v1588_v1 }
 0x1b8   :  { %1595 = vpow2.f32 %v1477_v59  ;;  %v571_v6 = vadd.f32 1.0, %v1590_v2 }
 0x1b9   :  { %1597 = vpow2.f32 %v1476_v61 }
 0x1ba   :  { %1599 = vrcp.f32 %v572_v63 }
 0x1bb   :  { %1601 = vrcp.f32 %v566_v0 }
 0x1bc   :  { %1603 = vrcp.f32 %v567_v4 }
 0x1bd   :  { %1605 = vrcp.f32 %v571_v6 }
 0x1c0   :  { %v1919_v3 = vpop.eup %1591 }
 0x1c1   :  { %v1594_v5 = vpop.eup %1593  ;;  %v589_v9 = vsub.f32 1.0, %v1919_v3 }
 0x1c2   :  { %v1596_v7 = vpop.eup %1595  ;;  %v568_v8 = vadd.f32 1.0, %v1594_v5 }
 0x1c3   :  { %v570_v10 = vadd.f32 1.0, %v1596_v7  ;;  %v1598_v11 = vpop.eup %1597 }
 0x1c4   :  { %v1600_v14 = vpop.eup %1599  ;;  %1607 = vrcp.f32 %v568_v8  ;;  %v569_v15 = vadd.f32 1.0, %v1598_v11 }
 0x1c5   :  { %1609 = vrcp.f32 %v570_v10  ;;  %v1602_v16 = vpop.eup %1601  ;;  %v596_v17 = vsub.f32 1.0, %v1600_v14 }
 0x1c6   :  { %v590_v20 = vsub.f32 1.0, %v1602_v16  ;;  %1611 = vrcp.f32 %v569_v15  ;;  %v1604_v21 = vpop.eup %1603 }
 0x1c7   :  { %v1606_v24 = vpop.eup %1605  ;;  %v591_v26 = vsub.f32 1.0, %v1604_v21 }
 0x1c8   :  { %v595_v29 = vsub.f32 1.0, %v1606_v24 }
 0x1ce   :  { %v1925_v27 = vpop.eup %1607 }
 0x1cf   :  { %v1927_v30 = vpop.eup %1609  ;;  %v592_v22 = vsub.f32 1.0, %v1925_v27 }
 0x1d0   :  { %v594_v35 = vsub.f32 1.0, %v1927_v30  ;;  %v1612_v36 = vpop.eup %1611 }
 0x1d1   :  { %v593_v40 = vsub.f32 1.0, %v1612_v36 }
 0x211   :  { %v606_v12 = vpop.permute.xlu1 %605 }
 0x212   :  { %v629_v13 = vmul.f32 %v606_v12, %v589_v9 }
 0x214   :  { %645 = vrot.lane.b32.xlu1 %v629_v13, %s1661_s22 }
 0x216   :  { %v620_v18 = vpop.permute.xlu0 %619 }
 0x217   :  { %v636_v19 = vmul.f32 %v620_v18, %v596_v17 }
 0x219   :  { %v608_v23 = vpop.permute.xlu1 %607  ;;  %659 = vrot.lane.b32.xlu0 %v636_v19, %s1661_s22 }
 0x21a   :  { %v630_v25 = vmul.f32 %v608_v23, %v590_v20 }
 0x21c   :  { %647 = vrot.lane.b32.xlu1 %v630_v25, %s1661_s22 }
 0x21d   :  { %v610_v28 = vpop.permute.xlu1 %609 }
 0x21e   :  { %v631_v31 = vmul.f32 %v610_v28, %v591_v26  ;;  %v618_v32 = vpop.permute.xlu0 %617 }
 0x21f   :  { %v635_v33 = vmul.f32 %v618_v32, %v595_v29 }
 0x220   :  { %649 = vrot.lane.b32.xlu1 %v631_v31, %s1661_s22 }
 0x221   :  { %657 = vrot.lane.b32.xlu0 %v635_v33, %s1661_s22  ;;  %v612_v34 = vpop.permute.xlu1 %611 }
 0x222   :  { %v632_v37 = vmul.f32 %v612_v34, %v592_v22  ;;  %v616_v38 = vpop.permute.xlu0 %615 }
 0x223   :  { %v634_v39 = vmul.f32 %v616_v38, %v594_v35 }
 0x224   :  { %651 = vrot.lane.b32.xlu1 %v632_v37, %s1661_s22 }
 0x225   :  { %655 = vrot.lane.b32.xlu0 %v634_v39, %s1661_s22 }
 0x226   :  { %v614_v41 = vpop.permute.xlu0 %613 }
 0x227   :  { %v633_v42 = vmul.f32 %v614_v41, %v593_v40 }
 0x229   :  { %653 = vrot.lane.b32.xlu0 %v633_v42, %s1661_s22 }
 0x286   :  { %v646_v43 = vpop.permute.xlu1 %645 }
 0x287   :  { %670 = vst.msk [vmem:[#allocation2] sm:$0x3] %vm669_vm5, %v646_v43 }
 0x288   :  { %679 = vst.msk [vmem:[#allocation2] sm:$0x3] %vm678_vm6, %v1919_v3 }
 0x289   :  { %688 = vst.msk [vmem:[#allocation2] sm:$0x3] %vm687_vm7, %v646_v43 }
 0x28a   :  { %697 = vst.msk [vmem:[#allocation2] sm:$0x3] %vm696_vm8, %v1919_v3 }
 0x28b   :  { %v660_v44 = vpop.permute.xlu0 %659 }
 0x28c   :  { %677 = vst.msk [vmem:[#allocation2 + $0xe] sm:$0x3] %vm669_vm5, %v660_v44 }
 0x28d   :  { %686 = vst.msk [vmem:[#allocation2 + $0xe] sm:$0x3] %vm678_vm6, %v1600_v14 }
 0x28e   :  { %v648_v45 = vpop.permute.xlu1 %647  ;;  %695 = vst.msk [vmem:[#allocation2 + $0xe] sm:$0x3] %vm687_vm7, %v660_v44 }
 0x28f   :  { %671 = vst.msk [vmem:[#allocation2 + $0x2] sm:$0x3] %vm669_vm5, %v648_v45 }
 0x290   :  { %704 = vst.msk [vmem:[#allocation2 + $0xe] sm:$0x3] %vm696_vm8, %v1600_v14 }
 0x291   :  { %680 = vst.msk [vmem:[#allocation2 + $0x2] sm:$0x3] %vm678_vm6, %v1602_v16  ;;  %v1949_v46 = vld [vmem:[#allocation2] sm:$0x3] }
 0x292   :  { %689 = vst.msk [vmem:[#allocation2 + $0x2] sm:$0x3] %vm687_vm7, %v648_v45  ;;  %708 = vrot.lane.b32.xlu1 %v1949_v46, %s1660_s21  ;;  %v650_v47 = vpop.permute.xlu1 %649  ;;  %v2034_v2 = vld [vmem:[#allocation2] sm:$0x3]  ;;  %v706_v3 = vmul.f32 0.0, %v1949_v46 }
 0x293   :  { %698 = vst.msk [vmem:[#allocation2 + $0x2] sm:$0x3] %vm696_vm8, %v1602_v16  ;;  %v658_v48 = vpop.permute.xlu0 %657 }
 0x294   :  { %672 = vst.msk [vmem:[#allocation2 + $0x4] sm:$0x3] %vm669_vm5, %v650_v47  ;;  %676 = vst.msk [vmem:[#allocation2 + $0xc] sm:$0x3] %vm669_vm5, %v658_v48 }
 0x295   :  { %681 = vst.msk [vmem:[#allocation2 + $0x4] sm:$0x3] %vm678_vm6, %v1604_v21  ;;  %685 = vst.msk [vmem:[#allocation2 + $0xc] sm:$0x3] %vm678_vm6, %v1606_v24 }
 0x296   :  { %690 = vst.msk [vmem:[#allocation2 + $0x4] sm:$0x3] %vm687_vm7, %v650_v47  ;;  %694 = vst.msk [vmem:[#allocation2 + $0xc] sm:$0x3] %vm687_vm7, %v658_v48  ;;  %v652_v49 = vpop.permute.xlu1 %651 }
 0x297   :  { %699 = vst.msk [vmem:[#allocation2 + $0x4] sm:$0x3] %vm696_vm8, %v1604_v21  ;;  %703 = vst.msk [vmem:[#allocation2 + $0xc] sm:$0x3] %vm696_vm8, %v1606_v24  ;;  %v656_v50 = vpop.permute.xlu0 %655  ;;  %v1963_v51 = vld [vmem:[#allocation2 + $0xe] sm:$0x3] }
 0x298   :  { %673 = vst.msk [vmem:[#allocation2 + $0x6] sm:$0x3] %vm669_vm5, %v652_v49  ;;  %675 = vst.msk [vmem:[#allocation2 + $0xa] sm:$0x3] %vm669_vm5, %v656_v50  ;;  %857 = vrot.lane.b32.xlu0 %v1963_v51, %s1660_s21  ;;  %v2028_v1 = vld [vmem:[#allocation2 + $0xe] sm:$0x3] }
 0x299   :  { %682 = vst.msk [vmem:[#allocation2 + $0x6] sm:$0x3] %vm678_vm6, %v1925_v27  ;;  %684 = vst.msk [vmem:[#allocation2 + $0xa] sm:$0x3] %vm678_vm6, %v1927_v30  ;;  %v855_v6 = vmul.f32 0.0, %v1963_v51 }
 0x29a   :  { %691 = vst.msk [vmem:[#allocation2 + $0x6] sm:$0x3] %vm687_vm7, %v652_v49  ;;  %v1973_v52 = vld [vmem:[#allocation2 + $0x2] sm:$0x3]  ;;  %693 = vst.msk [vmem:[#allocation2 + $0xa] sm:$0x3] %vm687_vm7, %v656_v50 }
 0x29b   :  { %700 = vst.msk [vmem:[#allocation2 + $0x6] sm:$0x3] %vm696_vm8, %v1925_v27  ;;  %725 = vrot.lane.b32.xlu1 %v1973_v52, %s1660_s21  ;;  %702 = vst.msk [vmem:[#allocation2 + $0xa] sm:$0x3] %vm696_vm8, %v1927_v30  ;;  %v654_v53 = vpop.permute.xlu0 %653  ;;  %v2026_v0 = vld [vmem:[#allocation2 + $0x2] sm:$0x3] }
 0x29c   :  { %674 = vst.msk [vmem:[#allocation2 + $0x8] sm:$0x3] %vm669_vm5, %v654_v53 }
 0x29d   :  { %683 = vst.msk [vmem:[#allocation2 + $0x8] sm:$0x3] %vm678_vm6, %v1612_v36 }
 0x29e   :  { %v1984_v54 = vld [vmem:[#allocation2 + $0x4] sm:$0x3]  ;;  %692 = vst.msk [vmem:[#allocation2 + $0x8] sm:$0x3] %vm687_vm7, %v654_v53  ;;  %v1989_v55 = vld [vmem:[#allocation2 + $0xc] sm:$0x3] }
 0x29f   :  { %744 = vrot.lane.b32.xlu1 %v1984_v54, %s1660_s21  ;;  %701 = vst.msk [vmem:[#allocation2 + $0x8] sm:$0x3] %vm696_vm8, %v1612_v36  ;;  %875 = vrot.lane.b32.xlu0 %v1989_v55, %s1660_s21  ;;  %v2018_v62 = vld [vmem:[#allocation2 + $0x4] sm:$0x3]  ;;  %v2020_v63 = vld [vmem:[#allocation2 + $0xc] sm:$0x3] }
 0x2a2   :  { %v1994_v56 = vld [vmem:[#allocation2 + $0x6] sm:$0x3]  ;;  %v1998_v57 = vld [vmem:[#allocation2 + $0xa] sm:$0x3] }
 0x2a3   :  { %763 = vrot.lane.b32.xlu1 %v1994_v56, %s1660_s21  ;;  %892 = vrot.lane.b32.xlu0 %v1998_v57, %s1660_s21  ;;  %v2010_v60 = vld [vmem:[#allocation2 + $0x6] sm:$0x3]  ;;  %v2012_v61 = vld [vmem:[#allocation2 + $0xa] sm:$0x3] }
 0x2a6   :  { %v2002_v58 = vld [vmem:[#allocation2 + $0x8] sm:$0x3] }
 0x2a7   :  { %v2004_v59 = vld [vmem:[#allocation2 + $0x8] sm:$0x3]  ;;  %909 = vrot.lane.b32.xlu0 %v2002_v58, %s1660_s21 }
 0x2a8   :  { %782 = vrot.lane.b32.xlu1 %v2004_v59, %s1660_s21 }
 0x2ab   :  { %926 = vrot.lane.b32.xlu0 %v2010_v60, %s1660_s21 }
 0x2ac   :  { %801 = vrot.lane.b32.xlu1 %v2012_v61, %s1660_s21 }
 0x2af   :  { %943 = vrot.lane.b32.xlu0 %v2018_v62, %s1660_s21 }
 0x2b0   :  { %820 = vrot.lane.b32.xlu1 %v2020_v63, %s1660_s21 }
 0x2b3   :  { %960 = vrot.lane.b32.xlu0 %v2026_v0, %s1660_s21 }
 0x2b4   :  { %839 = vrot.lane.b32.xlu1 %v2028_v1, %s1660_s21 }
 0x2b7   :  { %977 = vrot.lane.b32.xlu0 %v2034_v2, %s1660_s21 }
 0x304   :  { %v709_v4 = vpop.permute.xlu1 %708 }
 0x305   :  { %v711_v5 = vadd.f32 %v709_v4, %v706_v3 }
 0x307   :  { %713 = vrot.lane.b32.xlu1 %v711_v5, %s1660_s21  ;;  %v723_v9 = vmul.f32 %v1973_v52, %v711_v5 }
 0x30a   :  { %v858_v7 = vpop.permute.xlu0 %857 }
 0x30b   :  { %v860_v8 = vadd.f32 %v858_v7, %v855_v6 }
 0x30d   :  { %v726_v10 = vpop.permute.xlu1 %725  ;;  %862 = vrot.lane.b32.xlu1 %v860_v8, %s1660_s21  ;;  %v873_v14 = vmul.f32 %v1989_v55, %v860_v8 }
 0x30e   :  { %v728_v11 = vadd.f32 %v726_v10, %v723_v9 }
 0x310   :  { %730 = vrot.lane.b32.xlu0 %v728_v11, %s1660_s21  ;;  %v742_v12 = vmul.f32 %v1984_v54, %v728_v11 }
 0x311   :  { %v745_v13 = vpop.permute.xlu1 %744  ;;  %v876_v16 = vpop.permute.xlu0 %875 }
 0x312   :  { %v747_v15 = vadd.f32 %v745_v13, %v742_v12  ;;  %v878_v17 = vadd.f32 %v876_v16, %v873_v14 }
 0x314   :  { %749 = vrot.lane.b32.xlu1 %v747_v15, %s1660_s21  ;;  %v761_v18 = vmul.f32 %v1994_v56, %v747_v15  ;;  %880 = vrot.lane.b32.xlu0 %v878_v17, %s1660_s21  ;;  %v890_v20 = vmul.f32 %v1998_v57, %v878_v17 }
 0x315   :  { %v764_v19 = vpop.permute.xlu1 %763  ;;  %v893_v23 = vpop.permute.xlu0 %892 }
 0x316   :  { %v766_v21 = vadd.f32 %v764_v19, %v761_v18  ;;  %v895_v24 = vadd.f32 %v893_v23, %v890_v20 }
 0x318   :  { %v780_v25 = vmul.f32 %v2004_v59, %v766_v21  ;;  %768 = vrot.lane.b32.xlu0 %v766_v21, %s1660_s21  ;;  %897 = vrot.lane.b32.xlu1 %v895_v24, %s1660_s21  ;;  %v907_v26 = vmul.f32 %v2002_v58, %v895_v24 }
 0x319   :  { %v910_v28 = vpop.permute.xlu0 %909 }
 0x31a   :  { %v783_v27 = vpop.permute.xlu1 %782  ;;  %v912_v30 = vadd.f32 %v910_v28, %v907_v26 }
 0x31b   :  { %v785_v29 = vadd.f32 %v783_v27, %v780_v25 }
 0x31c   :  { %914 = vrot.lane.b32.xlu0 %v912_v30, %s1660_s21  ;;  %v924_v32 = vmul.f32 %v2010_v60, %v912_v30 }
 0x31d   :  { %787 = vrot.lane.b32.xlu1 %v785_v29, %s1660_s21  ;;  %v799_v31 = vmul.f32 %v2012_v61, %v785_v29  ;;  %v927_v22 = vpop.permute.xlu0 %926 }
 0x31e   :  { %v802_v33 = vpop.permute.xlu1 %801  ;;  %v929_v35 = vadd.f32 %v927_v22, %v924_v32 }
 0x31f   :  { %v804_v34 = vadd.f32 %v802_v33, %v799_v31  ;;  %v1480_v31 = vld [vmem:[%s2288_s3] ss:$0 sm:$0xff] }
 0x320   :  { %v941_v37 = vmul.f32 %v2018_v62, %v929_v35 }
 0x321   :  { %806 = vrot.lane.b32.xlu0 %v804_v34, %s1660_s21  ;;  %931 = vrot.lane.b32.xlu1 %v929_v35, %s1660_s21  ;;  %v818_v36 = vmul.f32 %v2020_v63, %v804_v34  ;;  %v944_v39 = vpop.permute.xlu0 %943 }
 0x322   :  { %v821_v38 = vpop.permute.xlu1 %820  ;;  %v946_v41 = vadd.f32 %v944_v39, %v941_v37 }
 0x323   :  { %v823_v40 = vadd.f32 %v821_v38, %v818_v36 }
 0x324   :  { %v958_v43 = vmul.f32 %v2026_v0, %v946_v41 }
 0x325   :  { %825 = vrot.lane.b32.xlu1 %v823_v40, %s1660_s21  ;;  %948 = vrot.lane.b32.xlu0 %v946_v41, %s1660_s21  ;;  %v837_v42 = vmul.f32 %v2028_v1, %v823_v40  ;;  %v961_v45 = vpop.permute.xlu0 %960 }
 0x326   :  { %v840_v44 = vpop.permute.xlu1 %839  ;;  %v963_v48 = vadd.f32 %v961_v45, %v958_v43 }
 0x327   :  { %v842_v47 = vadd.f32 %v840_v44, %v837_v42 }
 0x328   :  { %v975_v49 = vmul.f32 %v2034_v2, %v963_v48 }
 0x329   :  { %844 = vrot.lane.b32.xlu0 %v842_v47, %s1660_s21  ;;  %965 = vrot.lane.b32.xlu1 %v963_v48, %s1660_s21  ;;  %v978_v50 = vpop.permute.xlu0 %977 }
 0x32a   :  { %v980_v53 = vadd.f32 %v978_v50, %v975_v49 }
 0x32d   :  { %982 = vrot.lane.b32.xlu0 %v980_v53, %s1660_s21 }
 0x379   :  { %v714_v3 = vpop.permute.xlu1 %713 }
 0x37a   :  { %v716_v4 = vmul.f32 %v714_v3, %v1949_v46 }
 0x37c   :  { %718 = vrot.lane.b32.xlu1 %v716_v4, %s1662_s23 }
 0x37f   :  { %v863_v5 = vpop.permute.xlu1 %862 }
 0x380   :  { %v865_v6 = vmul.f32 %v863_v5, %v1963_v51 }
 0x382   :  { %v731_v7 = vpop.permute.xlu0 %730  ;;  %867 = vrot.lane.b32.xlu1 %v865_v6, %s1663_s24 }
 0x383   :  { %v733_v8 = vmul.f32 %v731_v7, %v1973_v52 }
 0x385   :  { %735 = vrot.lane.b32.xlu0 %v733_v8, %s1662_s23 }
 0x386   :  { %v750_v9 = vpop.permute.xlu1 %749  ;;  %v881_v11 = vpop.permute.xlu0 %880 }
 0x387   :  { %v752_v10 = vmul.f32 %v750_v9, %v1984_v54  ;;  %v883_v46 = vmul.f32 %v881_v11, %v1989_v55 }
 0x389   :  { %754 = vrot.lane.b32.xlu1 %v752_v10, %s1662_s23  ;;  %885 = vrot.lane.b32.xlu0 %v883_v46, %s1663_s24 }
 0x38a   :  { %v898_v12 = vpop.permute.xlu1 %897  ;;  %v769_v51 = vpop.permute.xlu0 %768 }
 0x38b   :  { %v900_v13 = vmul.f32 %v898_v12, %v1998_v57  ;;  %v771_v14 = vmul.f32 %v769_v51, %v1994_v56 }
 0x38d   :  { %902 = vrot.lane.b32.xlu1 %v900_v13, %s1663_s24  ;;  %773 = vrot.lane.b32.xlu0 %v771_v14, %s1662_s23 }
 0x38e   :  { %v915_v15 = vpop.permute.xlu0 %914 }
 0x38f   :  { %v788_v52 = vpop.permute.xlu1 %787  ;;  %v917_v55 = vmul.f32 %v915_v15, %v2002_v58 }
 0x390   :  { %v790_v54 = vmul.f32 %v788_v52, %v2004_v59  ;;  %v1481_v52 = vld [vmem:[#allocation4] ss:$0 sm:$0xff] }
 0x391   :  { %919 = vrot.lane.b32.xlu0 %v917_v55, %s1663_s24 }
 0x392   :  { %792 = vrot.lane.b32.xlu1 %v790_v54, %s1662_s23 }
 0x393   :  { %v932_v16 = vpop.permute.xlu1 %931  ;;  %v807_v17 = vpop.permute.xlu0 %806 }
 0x394   :  { %v934_v57 = vmul.f32 %v932_v16, %v2010_v60  ;;  %v809_v56 = vmul.f32 %v807_v17, %v2012_v61 }
 0x396   :  { %936 = vrot.lane.b32.xlu1 %v934_v57, %s1663_s24  ;;  %811 = vrot.lane.b32.xlu0 %v809_v56, %s1662_s23 }
 0x397   :  { %v826_v18 = vpop.permute.xlu1 %825  ;;  %v949_v19 = vpop.permute.xlu0 %948 }
 0x398   :  { %v828_v59 = vmul.f32 %v826_v18, %v2020_v63  ;;  %v951_v58 = vmul.f32 %v949_v19, %v2018_v62 }
 0x39a   :  { %830 = vrot.lane.b32.xlu1 %v828_v59, %s1662_s23  ;;  %953 = vrot.lane.b32.xlu0 %v951_v58, %s1663_s24 }
 0x39b   :  { %v966_v20 = vpop.permute.xlu1 %965  ;;  %v845_v21 = vpop.permute.xlu0 %844 }
 0x39c   :  { %v968_v60 = vmul.f32 %v966_v20, %v2026_v0  ;;  %v847_v61 = vmul.f32 %v845_v21, %v2028_v1 }
 0x39e   :  { %970 = vrot.lane.b32.xlu1 %v968_v60, %s1663_s24  ;;  %849 = vrot.lane.b32.xlu0 %v847_v61, %s1662_s23  ;;  %s1666_s23 = smov [#allocation5]  }
 0x39f   :  { %v983_v23 = vpop.permute.xlu0 %982 }
 0x3a0   :  { %v985_v24 = vmul.f32 %v983_v23, %v2034_v2 }
 0x3a2   :  { %987 = vrot.lane.b32.xlu0 %v985_v24, %s1663_s24 }
 0x3ee   :  { %v719_v62 = vpop.permute.xlu1 %718 }
 0x3ef   :  { %721 = vst.msk [vmem:[#allocation3] sm:$0x3] %vm669_vm5, %v719_v62 }
 0x3f4   :  { %v868_v63 = vpop.permute.xlu1 %867 }
 0x3f7   :  { %v736_v25 = vpop.permute.xlu0 %735 }
 0x3f8   :  { %739 = vst.msk [vmem:[#allocation3 + $0x2] sm:$0x3] %vm669_vm5, %v736_v25 }
 0x3fb   :  { %v755_v26 = vpop.permute.xlu1 %754  ;;  %v886_v0 = vpop.permute.xlu0 %885 }
 0x3fc   :  { %758 = vst.msk [vmem:[#allocation3 + $0x4] sm:$0x3] %vm669_vm5, %v755_v26 }
 0x3ff   :  { %v903_v1 = vpop.permute.xlu1 %902  ;;  %v774_v27 = vpop.permute.xlu0 %773 }
 0x400   :  { %777 = vst.msk [vmem:[#allocation3 + $0x6] sm:$0x3] %vm669_vm5, %v774_v27 }
 0x403   :  { %v920_v2 = vpop.permute.xlu0 %919 }
 0x404   :  { %v793_v28 = vpop.permute.xlu1 %792 }
 0x405   :  { %796 = vst.msk [vmem:[#allocation3 + $0x8] sm:$0x3] %vm669_vm5, %v793_v28 }
 0x406   :  { %922 = vst.msk [vmem:[#allocation3 + $0x8] sm:$0x3] %vm870_vm9, %v920_v2 }
 0x408   :  { %v937_v29 = vpop.permute.xlu1 %936  ;;  %v812_v30 = vpop.permute.xlu0 %811 }
 0x409   :  { %939 = vst.msk [vmem:[#allocation3 + $0x6] sm:$0x3] %vm870_vm9, %v937_v29 }
 0x40a   :  { %815 = vst.msk [vmem:[#allocation3 + $0xa] sm:$0x3] %vm669_vm5, %v812_v30 }
 0x40b   :  { %905 = vst.msk [vmem:[#allocation3 + $0xa] sm:$0x3] %vm870_vm9, %v903_v1 }
 0x40c   :  { %v831_v32 = vpop.permute.xlu1 %830  ;;  %v954_v33 = vpop.permute.xlu0 %953 }
 0x40d   :  { %834 = vst.msk [vmem:[#allocation3 + $0xc] sm:$0x3] %vm669_vm5, %v831_v32  ;;  %v2116_v22 = vld [vmem:[#allocation3 + $0x8] sm:$0x3] }
 0x40e   :  { %956 = vst.msk [vmem:[#allocation3 + $0x4] sm:$0x3] %vm870_vm9, %v954_v33  ;;  %888 = vst.msk [vmem:[#allocation3 + $0xc] sm:$0x3] %vm870_vm9, %v886_v0  ;;  %v1010_v34 = vmul.f32 %v1480_v31, %v2116_v22 }
 0x410   :  { %v971_v35 = vpop.permute.xlu1 %970  ;;  %v850_v36 = vpop.permute.xlu0 %849  ;;  %v1027_v37 = vsel %vm1014_vm10, %v1010_v34, 0.0  ;;  %v2121_v38 = vld [vmem:[#allocation3 + $0x6] sm:$0x3] }
 0x411   :  { %973 = vst.msk [vmem:[#allocation3 + $0x2] sm:$0x3] %vm870_vm9, %v971_v35  ;;  %1028 = vadd.xlane.f32.xlu0 %v1027_v37  ;;  %v1009_v39 = vmul.f32 %v1480_v31, %v2121_v38 }
 0x412   :  { %853 = vst.msk [vmem:[#allocation3 + $0xe] sm:$0x3] %vm669_vm5, %v850_v36  ;;  %v2126_v40 = vld [vmem:[#allocation3 + $0xa] sm:$0x3] }
 0x413   :  { %871 = vst.msk [vmem:[#allocation3 + $0xe] sm:$0x3] %vm870_vm9, %v868_v63  ;;  %v1024_v41 = vsel %vm1014_vm10, %v1009_v39, 0.0  ;;  %v1011_v42 = vmul.f32 %v1480_v31, %v2126_v40 }
 0x414   :  { %1025 = vadd.xlane.f32.xlu1 %v1024_v41  ;;  %v988_v43 = vpop.permute.xlu0 %987 }
 0x415   :  { %v2131_v44 = vld [vmem:[#allocation3 + $0x4] sm:$0x3]  ;;  %990 = vst.msk [vmem:[#allocation3] sm:$0x3] %vm870_vm9, %v988_v43  ;;  %v1030_v47 = vsel %vm1014_vm10, %v1011_v42, 0.0 }
 0x416   :  { %v1008_v45 = vmul.f32 %v1480_v31, %v2131_v44  ;;  %v2139_v50 = vld [vmem:[#allocation3 + $0xc] sm:$0x3] }
 0x417   :  { %v1012_v4 = vmul.f32 %v1480_v31, %v2139_v50 }
 0x418   :  { %v1021_v48 = vsel %vm1014_vm10, %v1008_v45, 0.0  ;;  %1031 = vadd.xlane.f32.xlu1 %v1030_v47  ;;  %v2137_v49 = vld [vmem:[#allocation3 + $0x2] sm:$0x3] }
 0x419   :  { %1022 = vadd.xlane.f32.xlu0 %v1021_v48  ;;  %v1007_v53 = vmul.f32 %v1480_v31, %v2137_v49  ;;  %v1033_v8 = vsel %vm1014_vm10, %v1012_v4, 0.0 }
 0x41a   :  { %v2146_v6 = vld [vmem:[#allocation3 + $0xe] sm:$0x3] }
 0x41b   :  { %v1018_v3 = vsel %vm1014_vm10, %v1007_v53, 0.0  ;;  %v1013_v10 = vmul.f32 %v1480_v31, %v2146_v6 }
 0x41c   :  { %v2144_v5 = vld [vmem:[#allocation3] sm:$0x3] }
 0x41d   :  { %1019 = vadd.xlane.f32.xlu0 %v1018_v3  ;;  %v1006_v7 = vmul.f32 %v1480_v31, %v2144_v5  ;;  %v1036_v11 = vsel %vm1014_vm10, %v1013_v10, 0.0  ;;  %v1196_v4 = vsel %vm1014_vm10, %v2144_v5, 0.0 }
 0x41f   :  { %v1015_v9 = vsel %vm1014_vm10, %v1006_v7, 0.0 }
 0x420   :  { %1016 = vadd.xlane.f32.xlu1 %v1015_v9 }
 0x421   :  { %1034 = vadd.xlane.f32.xlu0 %v1033_v8 }
 0x424   :  { %1037 = vadd.xlane.f32.xlu1 %v1036_v11  ;;  %v1197_v11 = vsel %vm1014_vm10, %v2137_v49, 0.0 }
 0x49e   :  { %v1029_v46 = vpop.xlane.xlu0 %1028 }
 0x49f   :  { %v1050_v55 = vadd.f32 %v1481_v52, %v1029_v46 }
 0x4a1   :  { %v1026_v12 = vpop.xlane.xlu1 %1025  ;;  %v1059_v20 = vsel %vm1054_vm11, %v1050_v55, -inf }
 0x4a2   :  { %v1049_v56 = vadd.f32 %v1481_v52, %v1026_v12  ;;  %v1198_v12 = vadd.f32 %v1197_v11, %v1196_v4  ;;  %v1189_v4 = vsel %vm1014_vm10, %v2139_v50, -inf }
 0x4a4   :  { %v1058_v24 = vsel %vm1054_vm11, %v1049_v56, -inf }
 0x4a5   :  { %v1032_v13 = vpop.xlane.xlu1 %1031 }
 0x4a6   :  { %v1023_v51 = vpop.xlane.xlu0 %1022  ;;  %v1051_v18 = vadd.f32 %v1481_v52, %v1032_v13 }
 0x4a7   :  { %v1048_v19 = vadd.f32 %v1481_v52, %v1023_v51 }
 0x4a8   :  { %v1061_v62 = vsel %vm1054_vm11, %v1051_v18, -inf }
 0x4a9   :  { %v1057_v63 = vsel %vm1054_vm11, %v1048_v19, -inf }
 0x4aa   :  { %v1020_v14 = vpop.xlane.xlu0 %1019 }
 0x4ab   :  { %v1047_v16 = vadd.f32 %v1481_v52, %v1020_v14 }
 0x4ad   :  { %v1017_v15 = vpop.xlane.xlu1 %1016  ;;  %v1056_v21 = vsel %vm1054_vm11, %v1047_v16, -inf }
 0x4ae   :  { %v1035_v54 = vpop.xlane.xlu0 %1034  ;;  %v1046_v17 = vadd.f32 %v1481_v52, %v1017_v15  ;;  %v1062_v26 = vmax.f32 %v1056_v21, %v1061_v62 }
 0x4af   :  { %v1052_v57 = vadd.f32 %v1481_v52, %v1035_v54  ;;  %v1199_v54 = vsel %vm1014_vm10, %v2131_v44, 0.0 }
 0x4b0   :  { %v1055_v59 = vsel %vm1054_vm11, %v1046_v17, -inf }
 0x4b1   :  { %v1038_v58 = vpop.xlane.xlu1 %1037  ;;  %v1063_v60 = vsel %vm1054_vm11, %v1052_v57, -inf  ;;  %v1060_v23 = vmax.f32 %v1055_v59, %v1059_v20  ;;  %v1201_v59 = vsel %vm1014_vm10, %v2121_v38, 0.0 }
 0x4b2   :  { %v1053_v61 = vadd.f32 %v1481_v52, %v1038_v58  ;;  %v1064_v0 = vmax.f32 %v1057_v63, %v1063_v60  ;;  %v1205_v63 = vsel %vm1014_vm10, %v2126_v40, 0.0 }
 0x4b3   :  { %v1067_v27 = vmax.f32 %v1060_v23, %v1062_v26  ;;  %v1203_v23 = vsel %vm1014_vm10, %v2116_v22, 0.0  ;;  %v1207_v26 = vsel %vm1014_vm10, %v2139_v50, 0.0 }
 0x4b4   :  { %v1065_v25 = vsel %vm1054_vm11, %v1053_v61, -inf }
 0x4b5   :  { %v1066_v1 = vmax.f32 %v1058_v24, %v1065_v25 }
 0x4b7   :  { %v1068_v28 = vmax.f32 %v1064_v0, %v1066_v1 }
 0x4b9   :  { %v1069_v2 = vmax.f32 %v1067_v27, %v1068_v28  ;;  %v1209_v27 = vsel %vm1014_vm10, %v2146_v6, 0.0 }
 0x4bb   :  { %v1070_v29 = vsub.f32 %v1046_v17, %v1069_v2  ;;  %v1071_v30 = vsub.f32 %v1047_v16, %v1069_v2  ;;  %v1072_v31 = vsub.f32 %v1048_v19, %v1069_v2  ;;  %v1073_v32 = vsub.f32 %v1049_v56, %v1069_v2 }
 0x4bc   :  { %v1074_v33 = vsub.f32 %v1050_v55, %v1069_v2  ;;  %v1075_v37 = vsub.f32 %v1051_v18, %v1069_v2  ;;  %v1076_v41 = vsub.f32 %v1052_v57, %v1069_v2  ;;  %v1077_v43 = vsub.f32 %v1053_v61, %v1069_v2 }
 0x4bd   :  { %v1078_v34 = vmul.f32 1.442695, %v1070_v29  ;;  %v1080_v35 = vmul.f32 1.442695, %v1071_v30  ;;  %v1082_v36 = vmul.f32 1.442695, %v1072_v31  ;;  %v1200_v16 = vadd.f32 %v1199_v54, %v1198_v12 }
 0x4be   :  { %v1084_v39 = vmul.f32 1.442695, %v1073_v32  ;;  %v1086_v42 = vmul.f32 1.442695, %v1074_v33  ;;  %v1088_v45 = vmul.f32 1.442695, %v1075_v37 }
 0x4bf   :  { %1613 = vpow2.f32 %v1078_v34  ;;  %v1090_v47 = vmul.f32 1.442695, %v1076_v41  ;;  %v1092_v48 = vmul.f32 1.442695, %v1077_v43  ;;  %v1202_v21 = vadd.f32 %v1201_v59, %v1200_v16  ;;  %v1556_v34 = vld [vmem:[%s2290_s5] sm:$0xff]   ;;  %v1559_v12 = vld [vmem:[%s2290_s5 + $0x18] sm:$0xff]  }
 0x4c0   :  { %1615 = vpow2.f32 %v1080_v35  ;;  %v1664_v35 = vmov 0.0   ;;  %v1181_v37 = vsel %vm1014_vm10, %v2144_v5, -inf  ;;  %v1185_v41 = vsel %vm1014_vm10, %v2116_v22, -inf }
 0x4c1   :  { %1617 = vpow2.f32 %v1082_v36  ;;  %v1204_v62 = vadd.f32 %v1203_v23, %v1202_v21  ;;  %1509 = vmatprep.subr.bf16.mxu1 %v1664_v35  ;;  %1525 = vmatprep.subr.bf16.mxu0 %v1664_v35  ;;  %v1191_v43 = vsel %vm1014_vm10, %v2146_v6, -inf }
 0x4c2   :  { %1619 = vpow2.f32 %v1084_v39  ;;  %1510 = vmatpush3.bf16.msra.mxu1 %v1556_v34  ;;  %v1557_v39 = vld [vmem:[%s2290_s5 + $0x8] sm:$0xff]   ;;  %1521 = vmatprep.mubr.msk.bf16.mxu1 %vm1665_vm12, %v1664_v35 }
 0x4c3   :  { %1621 = vpow2.f32 %v1086_v42  ;;  %v1206_v25 = vadd.f32 %v1205_v63, %v1204_v62  ;;  %1511 = vmatprep.subr.bf16.mxu1 %v1664_v35  ;;  %v1182_v42 = vsel %vm1014_vm10, %v2137_v49, -inf  ;;  %1529 = vmatprep.mubr.msk.bf16.mxu0 %vm1665_vm12, %v1664_v35 }
 0x4c4   :  { %1623 = vpow2.f32 %v1088_v45 }
 0x4c5   :  { %1625 = vpow2.f32 %v1090_v47  ;;  %v1208_v0 = vadd.f32 %v1207_v26, %v1206_v25  ;;  %v1186_v47 = vmax.f32 %v1181_v37, %v1185_v41 }
 0x4c6   :  { %1627 = vpow2.f32 %v1092_v48  ;;  %1512 = vmatpush3.bf16.msra.mxu1 %v1557_v39  ;;  %v1184_v48 = vsel %vm1014_vm10, %v2121_v38, -inf }
 0x4c7   :  { %v1210_v29 = vadd.f32 %v1209_v27, %v1208_v0  ;;  %1513 = vmatprep.subr.bf16.mxu1 %v1664_v35 }
 0x4c9   :  { %v1614_v53 = vpop.eup %1613  ;;  %v1211_v31 = vmul.f32 0.125, %v1210_v29 }
 0x4ca   :  { %v1616_v3 = vpop.eup %1615  ;;  %v1094_v7 = vsel %vm1054_vm11, %v1614_v53, 0.0 }
 0x4cb   :  { %v1618_v8 = vpop.eup %1617  ;;  %v1095_v9 = vsel %vm1054_vm11, %v1616_v3, 0.0 }
 0x4cc   :  { %v1620_v10 = vpop.eup %1619  ;;  %v1096_v46 = vadd.f32 %v1095_v9, %v1094_v7  ;;  %v1097_v51 = vsel %vm1054_vm11, %v1618_v8, 0.0  ;;  %v1558_v7 = vld [vmem:[%s2290_s5 + $0x10] sm:$0xff]   ;;  %v1192_v9 = vmax.f32 %v1184_v48, %v1191_v43  ;;  %v1564_v43 = vld [vmem:[%s2294_s9] sm:$0xff]  }
 0x4cd   :  { %v1622_v13 = vpop.eup %1621  ;;  %v1099_v52 = vsel %vm1054_vm11, %v1620_v10, 0.0  ;;  %1514 = vmatpush3.bf16.msra.mxu1 %v1558_v7 }
 0x4ce   :  { %v1098_v14 = vadd.f32 %v1097_v51, %v1096_v46  ;;  %v1624_v15 = vpop.eup %1623  ;;  %v1101_v17 = vsel %vm1054_vm11, %v1622_v13, 0.0  ;;  %1515 = vmatprep.subr.bf16.mxu1 %v1664_v35 }
 0x4cf   :  { %v1626_v57 = vpop.eup %1625  ;;  %v1103_v18 = vsel %vm1054_vm11, %v1624_v15, 0.0 }
 0x4d0   :  { %v1100_v55 = vadd.f32 %v1099_v52, %v1098_v14  ;;  %v1628_v19 = vpop.eup %1627  ;;  %v1105_v20 = vsel %vm1054_vm11, %v1626_v57, 0.0  ;;  %v1560_v14 = vld [vmem:[%s2290_s5 + $0x20] sm:$0xff]   ;;  %v1561_v52 = vld [vmem:[%s2290_s5 + $0x28] sm:$0xff]  }
 0x4d1   :  { %v1107_v61 = vsel %vm1054_vm11, %v1628_v19, 0.0  ;;  %1516 = vmatpush3.bf16.msra.mxu1 %v1559_v12 }
 0x4d2   :  { %v1102_v56 = vadd.f32 %v1101_v17, %v1100_v55  ;;  %1517 = vmatprep.subr.bf16.mxu1 %v1664_v35 }
 0x4d4   :  { %v1104_v58 = vadd.f32 %v1103_v18, %v1102_v56 }
 0x4d5   :  { %1518 = vmatpush3.bf16.msra.mxu1 %v1560_v14 }
 0x4d6   :  { %v1106_v60 = vadd.f32 %v1105_v20, %v1104_v58  ;;  %1519 = vmatprep.subr.bf16.mxu1 %v1664_v35 }
 0x4d8   :  { %v1108_v24 = vadd.f32 %v1107_v61, %v1106_v60 }
 0x4d9   :  { %1520 = vmatpush3.bf16.msra.mxu1 %v1561_v52 }
 0x4da   :  { %1629 = vrcp.f32 %v1108_v24 }
 0x4e4   :  { %v1630_v1 = vpop.eup %1629 }
 0x4e5   :  { %v1111_v28 = vmul.f32 %v1630_v1, %v1616_v3  ;;  %v1110_v2 = vmul.f32 %v1630_v1, %v1614_v53  ;;  %v1112_v30 = vmul.f32 %v1630_v1, %v1618_v8  ;;  %v1113_v32 = vmul.f32 %v1630_v1, %v1620_v10 }
 0x4e6   :  { %v1114_v33 = vmul.f32 %v1630_v1, %v1622_v13  ;;  %v1115_v36 = vmul.f32 %v1630_v1, %v1624_v15  ;;  %v1116_v45 = vmul.f32 %v1630_v1, %v1626_v57  ;;  %v1187_v53 = vsel %vm1014_vm10, %v2126_v40, -inf  ;;  %v1562_v15 = vld [vmem:[%s2292_s7] sm:$0xff]  }
 0x4e7   :  { %1125 = vperm.xlu1 %1552, %v1111_v28   ;;  %1120 = vperm.xlu0 %1551, %v1110_v2   ;;  %v1183_v3 = vsel %vm1014_vm10, %v2131_v44, -inf  ;;  %v1188_v8 = vmax.f32 %v1182_v42, %v1187_v53  ;;  %v1117_v10 = vmul.f32 %v1630_v1, %v1628_v19 }
 0x4e8   :  { %v1190_v11 = vmax.f32 %v1183_v3, %v1189_v4  ;;  %1526 = vmatpush3.bf16.msra.mxu0 %v1562_v15 }
 0x4e9   :  { %v1193_v46 = vmax.f32 %v1186_v47, %v1188_v8  ;;  %1527 = vmatprep.subr.bf16.mxu0 %v1664_v35  ;;  %v1490_v47 = vld [vmem:[%s2293_s8] ss:$0 sm:$0xff] }
 0x4ea   :  { %v1194_v51 = vmax.f32 %v1190_v11, %v1192_v9 }
 0x4eb   :  { %1130 = vperm.xlu1 %1552, %v1112_v30   ;;  %1217 = vrot.lane.b32.xlu0 %v1211_v31, %s1663_s24  ;;  %s1460_s24 = sshll.u32 %s1666_s23, 4  ;;  %s1461_s24 = int_to_ptr.vmem [resolvable:$true] %s1460_s24 }
 0x4ec   :  { %v1195_v13 = vmax.f32 %v1193_v46, %v1194_v51  ;;  %s1631_s8 = scalar_lea.vmem %s1461_s24, 32  ;;  %p1636_p1 = scmp.lt.s32.totalorder %s1461_s24, %s1461_s24 }
 0x4ed   :  { %p1632_p0 = scmp.ne.s32.totalorder %s1461_s24, %s1631_s8  ;;  %p1637_p2 = scmp.lt.s32.totalorder %s1631_s8, %s1631_s8 }
 0x4ef   :  { %1135 = vperm.xlu1 %1552, %v1113_v32   ;;  %p1638_p3 = por %p1637_p2, %p1636_p1 }
 0x4f1   :  { %p1639_p4 = pnand %p1638_p3, %p1632_p0 }
 0x4f3   :  { %1140 = vperm.xlu1 %1552, %v1114_v33   ;;  %v1563_v33 = vld [vmem:[%s2292_s7 + $0x8] sm:$0xff]  }
 0x4f4   :  { %1528 = vmatpush3.bf16.msra.mxu0 %v1563_v33 }
 0x4f5   :  { %1533 = vmatprep.subr.bf16.mxu0 %v1664_v35 }
 0x4f7   :  { %1145 = vperm.xlu1 %1552, %v1115_v36  }
 0x4fb   :  { %1150 = vperm.xlu1 %1552, %v1116_v45  }
 0x4ff   :  { %1155 = vperm.xlu1 %1552, %v1117_v10   ;;  %v1494_v10 = vld [vmem:[%s2295_s10] ss:$0 sm:$0xff] }
 0x503   :  { %1213 = vrot.lane.b32.xlu1 %v1195_v13, %s1659_s20 }
 0x566   :  { %v1126_v54 = vpop.permute.xlu1 %1125  ;;  %v1121_v16 = vpop.permute.xlu0 %1120 }
 0x567   :  { %v1159_v57 = vmul.f32 %v1126_v54, %v2137_v49  ;;  %v1158_v56 = vmul.f32 %v1121_v16, %v2144_v5 }
 0x569   :  { %v1167_v59 = vsel %vm1014_vm10, %v1159_v57, 0.0  ;;  %v1166_v58 = vsel %vm1014_vm10, %v1158_v56, 0.0 }
 0x56a   :  { %v1131_v55 = vpop.permute.xlu1 %1130  ;;  %v1168_v61 = vadd.f32 %v1167_v59, %v1166_v58  ;;  %v1218_v30 = vpop.permute.xlu0 %1217 }
 0x56b   :  { %v1160_v18 = vmul.f32 %v1131_v55, %v2131_v44 }
 0x56d   :  { %v1169_v21 = vsel %vm1014_vm10, %v1160_v18, 0.0 }
 0x56e   :  { %v1136_v17 = vpop.permute.xlu1 %1135  ;;  %v1170_v5 = vadd.f32 %v1169_v21, %v1168_v61 }
 0x56f   :  { %v1161_v20 = vmul.f32 %v1136_v17, %v2121_v38 }
 0x571   :  { %v1171_v24 = vsel %vm1014_vm10, %v1161_v20, 0.0 }
 0x572   :  { %v1141_v19 = vpop.permute.xlu1 %1140  ;;  %v1172_v62 = vadd.f32 %v1171_v24, %v1170_v5 }
 0x573   :  { %v1162_v60 = vmul.f32 %v1141_v19, %v2116_v22 }
 0x575   :  { %v1173_v44 = vsel %vm1014_vm10, %v1162_v60, 0.0 }
 0x576   :  { %v1146_v23 = vpop.permute.xlu1 %1145  ;;  %v1174_v38 = vadd.f32 %v1173_v44, %v1172_v62 }
 0x577   :  { %v1163_v49 = vmul.f32 %v1146_v23, %v2126_v40 }
 0x579   :  { %v1175_v25 = vsel %vm1014_vm10, %v1163_v49, 0.0 }
 0x57a   :  { %v1151_v63 = vpop.permute.xlu1 %1150  ;;  %v1176_v1 = vadd.f32 %v1175_v25, %v1174_v38 }
 0x57b   :  { %v1164_v26 = vmul.f32 %v1151_v63, %v2139_v50 }
 0x57d   :  { %v1177_v0 = vsel %vm1014_vm10, %v1164_v26, 0.0 }
 0x57e   :  { %v1156_v22 = vpop.permute.xlu1 %1155  ;;  %v1178_v28 = vadd.f32 %v1177_v0, %v1176_v1 }
 0x57f   :  { %v1165_v27 = vmul.f32 %v1156_v22, %v2146_v6  ;;  %v1482_v6 = vld [vmem:[%s2291_s6] ss:$0 sm:$0xff] }
 0x581   :  { %v1179_v2 = vsel %vm1014_vm10, %v1165_v27, 0.0 }
 0x582   :  { %v1180_v40 = vadd.f32 %v1179_v2, %v1178_v28  ;;  %v1214_v29 = vpop.permute.xlu1 %1213 }
 0x584   :  { %v1221_v31 = vsel %vm1220_vm13, %v1180_v40, %v1214_v29 }
 0x585   :  { %v1223_v32 = vsel %vm1222_vm14, %v1221_v31, %v1218_v30 }
 0x586   :  { %v1224_v50 = vpack.c.bf16 %v1223_v32, %v1223_v32 }
 0x588   :  { %1522 = vmatmul.mubr.msk.bf16.vlgmr.msra.gmra.mrb[0].mxu1 %vm1280_vm15, %v1224_v50 }
 0x65b   :  { %v1318_v34 = vpop.f32.mrb[0].mxu1 }
 0x65c   :  { %v1319_v36 = vadd.f32 %v1482_v6, %v1318_v34  ;;  %v1523_v37 = vpop.f32.mrb[1].mxu1 }
 0x65d   :  { %v1321_v39 = vpop.f32.mrb[2].mxu1 }
 0x65e   :  { %v1324_v41 = vmax.f32 %v1319_v36, 0.0  ;;  %v1524_v42 = vpop.f32.mrb[3].mxu1 }
 0x660   :  { %v1325_v45 = vpack.c.bf16 %v1324_v41, %v1324_v41 }
 0x662   :  { %1530 = vmatmul.mubr.msk.bf16.vlgmr.msra.gmra.mrb[4].mxu0 %vm1220_vm13, %v1325_v45 }
 0x663   :  { %1534 = vmatpush3.bf16.msra.mxu0 %v1564_v43  ;;  %1535 = vmatprep.mubr.msk.bf16.mxu0 %vm1665_vm12, %v1664_v35 }
 0x735   :  { %v1386_v48 = vpop.f32.mrb[4].mxu0 }
 0x736   :  { %v1387_v53 = vadd.f32 %v1490_v47, %v1386_v48  ;;  %v1531_v3 = vpop.f32.mrb[5].mxu0 }
 0x737   :  { %v1389_v4 = vpop.f32.mrb[6].mxu0 }
 0x738   :  { %v1392_v7 = vmax.f32 %v1387_v53, 0.0  ;;  %v1532_v8 = vpop.f32.mrb[7].mxu0 }
 0x73a   :  { %v1393_v9 = vpack.c.bf16 %v1392_v7, %v1392_v7 }
 0x73c   :  { %1536 = vmatmul.mubr.msk.bf16.vlgmr.msra.gmra.mrb[8].mxu0 %vm107_vm0, %v1393_v9 }
 0x80f   :  { %v1446_v35 = vpop.f32.mrb[8].mxu0 }
 0x810   :  { %v1447_v11 = vadd.f32 %v1494_v10, %v1446_v35  ;;  %v1537_v46 = vpop.f32.mrb[9].mxu0 }
 0x811   :  { %v1449_v12 = vpop.f32.mrb[10].mxu0 }
 0x812   :  { %v1538_v51 = vpop.f32.mrb[11].mxu0  ;;  %1453 = vst.msk [vmem:[#allocation5] sm:$0x3] %vm1452_vm1, %v1447_v11 }
 0x813   :  { %1642 = shalt.err (!%p1639_p4)
}
 0x814   :  { %s1643_s10 = scalar_lea.hbm %s2296_s11, 32 }
 0x815   :  { %p1644_p5 = scmp.ne.s32.totalorder %s2296_s11, %s1643_s10  ;;  %p1647_p6 = scmp.lt.u32.totalorder %s1643_s10, %s2296_s11 }
 0x817   :  { %p1649_p7 = pnand %p1647_p6, %p1644_p5 }
 0x819   :  { %1652 = shalt.err (!%p1649_p7)
}
 0x81a   :  { %1463 = dma.vmem_to_hbm [thread:$0]  %s1461_s24, 32, %s2296_s11, [#allocation6]  }
 0x81b   :  { %1653 = dma.done.wait [#allocation6], 32  }
 0x81c   :  { %1654 = vsyncadd [#allocation6], 4294967264 }
 0x81d   :  { %1467 = vsyncpa [#allocation6], 1 }

</bundles_post_ra>
